<compile_context>
chip_gen: v6e
topology: v6e:2x2x1
jax: 0.10.0
libtpu: 0.0.40
codegen_flags: <defaults>
</compile_context>

<pallas_src>
import jax
import jax.numpy as jnp
from jax.experimental import pallas as pl

# ----------------------------- model config (small) --------------------------
B = 2              # batch
T = 8              # sequence length
C_IN = 4           # input_size
C_F = 16           # cnn_filters
K = 3              # cnn_kernel_size (padding=1 -> "same")
H = 32             # hidden_size
NUM_LAYERS = 3     # lstm layers
O = 3              # output_size

F32 = jnp.float32
BF16 = jnp.bfloat16


# ----------------------------- fused kernel ----------------------------------
def _lstm_gates(z, c_prev):
    """PyTorch LSTM cell math, gate order (i, f, g, o). z: (B, 4H) float32."""
    sig = jax.nn.sigmoid(z)                 # 1 EUP pass over the full (B, 4H) vreg
    i_g = sig[:, 0 * H:1 * H]
    f_g = sig[:, 1 * H:2 * H]
    o_g = sig[:, 3 * H:4 * H]
    g_g = jnp.tanh(z[:, 2 * H:3 * H])       # tanh only on the g slice
    c_new = f_g * c_prev + i_g * g_g
    h_new = o_g * jnp.tanh(c_new)
    return h_new, c_new


def fused_forward_kernel(
        x_ref,                        # (T*B, C_IN) f32, time-major flat (row = t*B + b)
        conv_w_ref, conv_b_ref,       # (K*C_IN, C_F) bf16, (1, C_F) f32
        wih0_ref, whh0_ref, b0_ref,   # (C_F, 4H) bf16, (H, 4H) bf16, (1, 4H) f32
        wcat1_ref, b1_ref,            # (2H, 4H) bf16 = [W_ih^T; W_hh^T], (1, 4H) f32
        wcat2_ref, b2_ref,            # (2H, 4H) bf16, (1, 4H) f32
        attn_w_ref, attn_b_ref,       # (H, 1) f32, (1, 1) f32
        fc_w_ref, fc_b_ref,           # (H, O) f32, (1, O) f32
        out_ref,                      # (B, O) f32
):
    # ---- Conv1d ("same", K=3) + ReLU: register-resident im2col, one matmul ----
    x_flat = x_ref[...]                                        # (T*B, C_IN)
    zrow = jnp.zeros((B, C_IN), F32)
    x_prev = jnp.concatenate([zrow, x_flat[:-B]], axis=0)      # src = t-1 (zero pad)
    x_next = jnp.concatenate([x_flat[B:], zrow], axis=0)       # src = t+1 (zero pad)
    im2col = jnp.concatenate([x_prev, x_flat, x_next], axis=1)  # (T*B, K*C_IN)
    conv_out = jnp.maximum(
        jnp.dot(im2col.astype(BF16), conv_w_ref[...],
                preferred_element_type=F32) + conv_b_ref[...],
        0.0)                                                   # (T*B, C_F) f32

    # ---- Layer-0 input projection hoisted over every timestep (one matmul) ----
    zin0 = jnp.dot(conv_out.astype(BF16), wih0_ref[...],
                   preferred_element_type=F32) + b0_ref[...]   # (T*B, 4H)
    whh0 = whh0_ref[...]
    wcat = [None, wcat1_ref[...], wcat2_ref[...]]
    bias = [None, b1_ref[...], b2_ref[...]]

    # ---- 3-layer LSTM, wavefront (diagonal) schedule, fully unrolled ----------
    h = [jnp.zeros((B, H), F32) for _ in range(NUM_LAYERS)]
    c = [jnp.zeros((B, H), F32) for _ in range(NUM_LAYERS)]
    outs = [[None] * T for _ in range(NUM_LAYERS)]             # SSA values only

    for d in range(T + NUM_LAYERS - 1):
        # layer 0: per-step work is just h @ W_hh (input projection hoisted)
        if d < T:
            z0 = zin0[d * B:(d + 1) * B, :] + jnp.dot(
                h[0].astype(BF16), whh0, preferred_element_type=F32)
            h[0], c[0] = _lstm_gates(z0, c[0])
            outs[0][d] = h[0]
        # layers 1..L-1: one fused matmul per step on [x_t, h_{t-1}]
        for l in range(1, NUM_LAYERS):
            t = d - l
            if 0 <= t < T:
                zcat = jnp.concatenate([outs[l - 1][t], h[l]], axis=1)   # (B, 2H)
                z = jnp.dot(zcat.astype(BF16), wcat[l],
                            preferred_element_type=F32) + bias[l]        # (B, 4H)
                h[l], c[l] = _lstm_gates(z, c[l])
                outs[l][t] = h[l]

    last = outs[NUM_LAYERS - 1]                                # list of (B, H) h_t

    # ---- attention pooling over time: scores via one matmul, softmax over T ---
    seq_flat = jnp.concatenate(last, axis=0)                   # (T*B, H)
    s = jnp.tanh(jnp.dot(seq_flat, attn_w_ref[...],
                         preferred_element_type=F32) + attn_b_ref[...])  # (T*B, 1)
    s_t = [s[t * B:(t + 1) * B, :] for t in range(T)]          # each (B, 1)
    m = s_t[0]
    for t in range(1, T):
        m = jnp.maximum(m, s_t[t])
    e_t = [jnp.exp(st - m) for st in s_t]
    denom = e_t[0]
    for t in range(1, T):
        denom = denom + e_t[t]
    pooled = e_t[0] * last[0]
    for t in range(1, T):
        pooled = pooled + e_t[t] * last[t]
    pooled = pooled * (1.0 / denom)                            # (B, H)

    # TODO(synk): dropout is identity here (inference mode; train-time RNG mask omitted).

    # ---- FC + softmax (torch dim=1) -------------------------------------------
    logits = jnp.dot(pooled, fc_w_ref[...],
                     preferred_element_type=F32) + fc_b_ref[...]          # (B, O)
    logits = logits - jnp.max(logits, axis=1, keepdims=True)
    el = jnp.exp(logits)
    out_ref[...] = el / jnp.sum(el, axis=1, keepdims=True)


# ----------------------------- wrapper ----------------------------------------
def operate_module_forward(x, params):
    """x: (B, T, C_IN) -> (B, O) class probabilities. One fused pallas_call."""
    # layout plumbing only: time-major flat rows (row = t*B + b)
    x_flat = jnp.transpose(x, (1, 0, 2)).reshape(T * B, C_IN).astype(jnp.float32)
    return pl.pallas_call(
        fused_forward_kernel,
        out_shape=jax.ShapeDtypeStruct((B, O), jnp.float32),
    )(x_flat,
      params["conv_w"], params["conv_b"],
      params["wih_0"], params["whh_0"], params["b_0"],
      params["wcat_1"], params["b_1"],
      params["wcat_2"], params["b_2"],
      params["attn_w"], params["attn_b"],
      params["fc_w"], params["fc_b"])


# ----------------------------- param init ------------------------------------
def init_params(key):
    """Kernel-ready parameter layout (documented mapping from PyTorch weights)."""
    def nrm(k, shape, scale=0.1, dtype=jnp.float32):
        return (scale * jax.random.normal(k, shape, dtype=jnp.float32)).astype(dtype)

    keys = jax.random.split(key, 13)
    ki = iter(keys)
    p = {}
    # Conv1d weight flattened for im2col: conv_w[k*C_in + ci, co] == W_torch[co, ci, k].
    p["conv_w"] = nrm(next(ki), (K * C_IN, C_F), dtype=BF16)
    p["conv_b"] = nrm(next(ki), (1, C_F))
    # LSTM layer 0: W_ih^T (C_F,4H), W_hh^T (H,4H); bias = b_ih + b_hh (1,4H).
    p["wih_0"] = nrm(next(ki), (C_F, 4 * H), dtype=BF16)
    p["whh_0"] = nrm(next(ki), (H, 4 * H), dtype=BF16)
    p["b_0"] = nrm(next(ki), (1, 4 * H))
    # LSTM layers 1,2: fused [W_ih^T; W_hh^T] -> (2H, 4H); bias = b_ih + b_hh.
    for l in (1, 2):
        p[f"wcat_{l}"] = nrm(next(ki), (2 * H, 4 * H), dtype=BF16)
        p[f"b_{l}"] = nrm(next(ki), (1, 4 * H))
    # attention Linear(H, 1): weight stored as an (H, 1) column.
    p["attn_w"] = nrm(next(ki), (H, 1))
    p["attn_b"] = nrm(next(ki), (1, 1))
    # fc Linear(H, O): weight stored transposed (H, O).
    p["fc_w"] = nrm(next(ki), (H, O))
    p["fc_b"] = nrm(next(ki), (1, O))
    return p


# ----------------------------- main -------------------------------------------
if __name__ == "__main__":
    key = jax.random.PRNGKey(0)
    k_x, k_p = jax.random.split(key)
    x = jax.random.normal(k_x, (B, T, C_IN), dtype=jnp.float32)  # (batch, seq, input_size)
    params = init_params(k_p)

    out = operate_module_forward(x, params)
    out = jax.block_until_ready(out)

    assert out.shape == (B, O)
    # each row is a softmax distribution over output classes
    assert bool(jnp.all(jnp.isfinite(out)))
    assert bool(jnp.allclose(jnp.sum(out, axis=1), 1.0, atol=1e-5))
    print("KERNEL_OK")
</pallas_src>

<mosaic_0001>
module attributes {stable_mosaic.version = 11 : i64} {
  func.func @fused_forward_kernel(%arg0: memref<16x4xf32, #tpu.memory_space<vmem>>, %arg1: memref<12x16xbf16, #tpu.memory_space<vmem>>, %arg2: memref<1x16xf32, #tpu.memory_space<vmem>>, %arg3: memref<16x128xbf16, #tpu.memory_space<vmem>>, %arg4: memref<32x128xbf16, #tpu.memory_space<vmem>>, %arg5: memref<1x128xf32, #tpu.memory_space<vmem>>, %arg6: memref<64x128xbf16, #tpu.memory_space<vmem>>, %arg7: memref<1x128xf32, #tpu.memory_space<vmem>>, %arg8: memref<64x128xbf16, #tpu.memory_space<vmem>>, %arg9: memref<1x128xf32, #tpu.memory_space<vmem>>, %arg10: memref<32x1xf32, #tpu.memory_space<vmem>>, %arg11: memref<1x1xf32, #tpu.memory_space<vmem>>, %arg12: memref<32x3xf32, #tpu.memory_space<vmem>>, %arg13: memref<1x3xf32, #tpu.memory_space<vmem>>, %arg14: memref<2x3xf32, #tpu.memory_space<vmem>>) attributes {dimension_semantics = [], scalar_prefetch = 0 : i64, scratch_operands = 0 : i64, tpu.core_type = #tpu.core_type<tc>} {
    %c0 = arith.constant 0 : index
    %c0_0 = arith.constant 0 : index
    %0 = vector.load %arg0[%c0, %c0_0] : memref<16x4xf32, #tpu.memory_space<vmem>>, vector<16x4xf32>
    %cst = arith.constant 0.000000e+00 : f32
    %1 = vector.broadcast %cst : f32 to vector<2x4xf32>
    %2 = vector.extract_strided_slice %0 {offsets = [0, 0], sizes = [14, 4], strides = [1, 1]} : vector<16x4xf32> to vector<14x4xf32>
    %3 = tpu.concatenate %1, %2 in 0 : vector<2x4xf32>, vector<14x4xf32> -> vector<16x4xf32>
    %4 = vector.extract_strided_slice %0 {offsets = [2, 0], sizes = [14, 4], strides = [1, 1]} : vector<16x4xf32> to vector<14x4xf32>
    %5 = tpu.concatenate %4, %1 in 0 : vector<14x4xf32>, vector<2x4xf32> -> vector<16x4xf32>
    %6 = tpu.concatenate %3, %0, %5 in 1 : vector<16x4xf32>, vector<16x4xf32>, vector<16x4xf32> -> vector<16x12xf32>
    %7 = arith.truncf %6 : vector<16x12xf32> to vector<16x12xbf16>
    %c0_1 = arith.constant 0 : index
    %c0_2 = arith.constant 0 : index
    %8 = vector.load %arg1[%c0_1, %c0_2] : memref<12x16xbf16, #tpu.memory_space<vmem>>, vector<12x16xbf16>
    %cst_3 = arith.constant dense<0.000000e+00> : vector<16x16xf32>
    %9 = tpu.matmul %7, %8, %cst_3 {dimension_numbers = #tpu.dot_dimension_numbers<[1], [0], [0], [1], [0, 0, 1, 1], [], []>} : vector<16x12xbf16>, vector<12x16xbf16>, vector<16x16xf32> -> vector<16x16xf32>
    %c0_4 = arith.constant 0 : index
    %c0_5 = arith.constant 0 : index
    %10 = vector.load %arg2[%c0_4, %c0_5] : memref<1x16xf32, #tpu.memory_space<vmem>>, vector<1x16xf32>
    %11 = vector.broadcast %10 : vector<1x16xf32> to vector<16x16xf32>
    %12 = arith.addf %9, %11 : vector<16x16xf32>
    %cst_6 = arith.constant 0.000000e+00 : f32
    %13 = vector.broadcast %cst_6 : f32 to vector<16x16xf32>
    %14 = arith.maximumf %12, %13 : vector<16x16xf32>
    %15 = arith.truncf %14 : vector<16x16xf32> to vector<16x16xbf16>
    %c0_7 = arith.constant 0 : index
    %c0_8 = arith.constant 0 : index
    %16 = vector.load %arg3[%c0_7, %c0_8] : memref<16x128xbf16, #tpu.memory_space<vmem>>, vector<16x128xbf16>
    %cst_9 = arith.constant dense<0.000000e+00> : vector<16x128xf32>
    %17 = tpu.matmul %15, %16, %cst_9 {dimension_numbers = #tpu.dot_dimension_numbers<[1], [0], [0], [1], [0, 0, 1, 1], [], []>} : vector<16x16xbf16>, vector<16x128xbf16>, vector<16x128xf32> -> vector<16x128xf32>
    %c0_10 = arith.constant 0 : index
    %c0_11 = arith.constant 0 : index
    %18 = vector.load %arg5[%c0_10, %c0_11] : memref<1x128xf32, #tpu.memory_space<vmem>>, vector<1x128xf32>
    %19 = vector.broadcast %18 : vector<1x128xf32> to vector<16x128xf32>
    %20 = arith.addf %17, %19 : vector<16x128xf32>
    %c0_12 = arith.constant 0 : index
    %c0_13 = arith.constant 0 : index
    %21 = vector.load %arg4[%c0_12, %c0_13] : memref<32x128xbf16, #tpu.memory_space<vmem>>, vector<32x128xbf16>
    %c0_14 = arith.constant 0 : index
    %c0_15 = arith.constant 0 : index
    %22 = vector.load %arg6[%c0_14, %c0_15] : memref<64x128xbf16, #tpu.memory_space<vmem>>, vector<64x128xbf16>
    %c0_16 = arith.constant 0 : index
    %c0_17 = arith.constant 0 : index
    %23 = vector.load %arg8[%c0_16, %c0_17] : memref<64x128xbf16, #tpu.memory_space<vmem>>, vector<64x128xbf16>
    %c0_18 = arith.constant 0 : index
    %c0_19 = arith.constant 0 : index
    %24 = vector.load %arg7[%c0_18, %c0_19] : memref<1x128xf32, #tpu.memory_space<vmem>>, vector<1x128xf32>
    %c0_20 = arith.constant 0 : index
    %c0_21 = arith.constant 0 : index
    %25 = vector.load %arg9[%c0_20, %c0_21] : memref<1x128xf32, #tpu.memory_space<vmem>>, vector<1x128xf32>
    %cst_22 = arith.constant 0.000000e+00 : f32
    %26 = vector.broadcast %cst_22 : f32 to vector<2x32xf32>
    %cst_23 = arith.constant 0.000000e+00 : f32
    %27 = vector.broadcast %cst_23 : f32 to vector<2x32xf32>
    %cst_24 = arith.constant 0.000000e+00 : f32
    %28 = vector.broadcast %cst_24 : f32 to vector<2x32xf32>
    %cst_25 = arith.constant 0.000000e+00 : f32
    %29 = vector.broadcast %cst_25 : f32 to vector<2x32xf32>
    %cst_26 = arith.constant 0.000000e+00 : f32
    %30 = vector.broadcast %cst_26 : f32 to vector<2x32xf32>
    %cst_27 = arith.constant 0.000000e+00 : f32
    %31 = vector.broadcast %cst_27 : f32 to vector<2x32xf32>
    %32 = vector.extract_strided_slice %20 {offsets = [0, 0], sizes = [2, 128], strides = [1, 1]} : vector<16x128xf32> to vector<2x128xf32>
    %33 = arith.truncf %26 : vector<2x32xf32> to vector<2x32xbf16>
    %cst_28 = arith.constant dense<0.000000e+00> : vector<2x128xf32>
    %34 = tpu.matmul %33, %21, %cst_28 {dimension_numbers = #tpu.dot_dimension_numbers<[1], [0], [0], [1], [0, 0, 1, 1], [], []>} : vector<2x32xbf16>, vector<32x128xbf16>, vector<2x128xf32> -> vector<2x128xf32>
    %35 = arith.addf %32, %34 : vector<2x128xf32>
    %36 = arith.negf %35 : vector<2x128xf32>
    %37 = math.exp %36 : vector<2x128xf32>
    %cst_29 = arith.constant 1.000000e+00 : f32
    %38 = vector.broadcast %cst_29 : f32 to vector<2x128xf32>
    %39 = arith.addf %38, %37 : vector<2x128xf32>
    %40 = arith.divf %38, %39 : vector<2x128xf32>
    %41 = vector.extract_strided_slice %40 {offsets = [0, 0], sizes = [2, 32], strides = [1, 1]} : vector<2x128xf32> to vector<2x32xf32>
    %42 = vector.extract_strided_slice %40 {offsets = [0, 32], sizes = [2, 32], strides = [1, 1]} : vector<2x128xf32> to vector<2x32xf32>
    %43 = vector.extract_strided_slice %40 {offsets = [0, 96], sizes = [2, 32], strides = [1, 1]} : vector<2x128xf32> to vector<2x32xf32>
    %44 = vector.extract_strided_slice %35 {offsets = [0, 64], sizes = [2, 32], strides = [1, 1]} : vector<2x128xf32> to vector<2x32xf32>
    %45 = math.tanh %44 : vector<2x32xf32>
    %46 = arith.mulf %42, %29 : vector<2x32xf32>
    %47 = arith.mulf %41, %45 : vector<2x32xf32>
    %48 = arith.addf %46, %47 : vector<2x32xf32>
    %49 = math.tanh %48 : vector<2x32xf32>
    %50 = arith.mulf %43, %49 : vector<2x32xf32>
    %51 = vector.extract_strided_slice %20 {offsets = [2, 0], sizes = [2, 128], strides = [1, 1]} : vector<16x128xf32> to vector<2x128xf32>
    %52 = arith.truncf %50 : vector<2x32xf32> to vector<2x32xbf16>
    %cst_30 = arith.constant dense<0.000000e+00> : vector<2x128xf32>
    %53 = tpu.matmul %52, %21, %cst_30 {dimension_numbers = #tpu.dot_dimension_numbers<[1], [0], [0], [1], [0, 0, 1, 1], [], []>} : vector<2x32xbf16>, vector<32x128xbf16>, vector<2x128xf32> -> vector<2x128xf32>
    %54 = arith.addf %51, %53 : vector<2x128xf32>
    %55 = arith.negf %54 : vector<2x128xf32>
    %56 = math.exp %55 : vector<2x128xf32>
    %cst_31 = arith.constant 1.000000e+00 : f32
    %57 = vector.broadcast %cst_31 : f32 to vector<2x128xf32>
    %58 = arith.addf %57, %56 : vector<2x128xf32>
    %59 = arith.divf %57, %58 : vector<2x128xf32>
    %60 = vector.extract_strided_slice %59 {offsets = [0, 0], sizes = [2, 32], strides = [1, 1]} : vector<2x128xf32> to vector<2x32xf32>
    %61 = vector.extract_strided_slice %59 {offsets = [0, 32], sizes = [2, 32], strides = [1, 1]} : vector<2x128xf32> to vector<2x32xf32>
    %62 = vector.extract_strided_slice %59 {offsets = [0, 96], sizes = [2, 32], strides = [1, 1]} : vector<2x128xf32> to vector<2x32xf32>
    %63 = vector.extract_strided_slice %54 {offsets = [0, 64], sizes = [2, 32], strides = [1, 1]} : vector<2x128xf32> to vector<2x32xf32>
    %64 = math.tanh %63 : vector<2x32xf32>
    %65 = arith.mulf %61, %48 : vector<2x32xf32>
    %66 = arith.mulf %60, %64 : vector<2x32xf32>
    %67 = arith.addf %65, %66 : vector<2x32xf32>
    %68 = math.tanh %67 : vector<2x32xf32>
    %69 = arith.mulf %62, %68 : vector<2x32xf32>
    %70 = tpu.concatenate %50, %27 in 1 : vector<2x32xf32>, vector<2x32xf32> -> vector<2x64xf32>
    %71 = arith.truncf %70 : vector<2x64xf32> to vector<2x64xbf16>
    %cst_32 = arith.constant dense<0.000000e+00> : vector<2x128xf32>
    %72 = tpu.matmul %71, %22, %cst_32 {dimension_numbers = #tpu.dot_dimension_numbers<[1], [0], [0], [1], [0, 0, 1, 1], [], []>} : vector<2x64xbf16>, vector<64x128xbf16>, vector<2x128xf32> -> vector<2x128xf32>
    %73 = vector.broadcast %24 : vector<1x128xf32> to vector<2x128xf32>
    %74 = arith.addf %72, %73 : vector<2x128xf32>
    %75 = arith.negf %74 : vector<2x128xf32>
    %76 = math.exp %75 : vector<2x128xf32>
    %cst_33 = arith.constant 1.000000e+00 : f32
    %77 = vector.broadcast %cst_33 : f32 to vector<2x128xf32>
    %78 = arith.addf %77, %76 : vector<2x128xf32>
    %79 = arith.divf %77, %78 : vector<2x128xf32>
    %80 = vector.extract_strided_slice %79 {offsets = [0, 0], sizes = [2, 32], strides = [1, 1]} : vector<2x128xf32> to vector<2x32xf32>
    %81 = vector.extract_strided_slice %79 {offsets = [0, 32], sizes = [2, 32], strides = [1, 1]} : vector<2x128xf32> to vector<2x32xf32>
    %82 = vector.extract_strided_slice %79 {offsets = [0, 96], sizes = [2, 32], strides = [1, 1]} : vector<2x128xf32> to vector<2x32xf32>
    %83 = vector.extract_strided_slice %74 {offsets = [0, 64], sizes = [2, 32], strides = [1, 1]} : vector<2x128xf32> to vector<2x32xf32>
    %84 = math.tanh %83 : vector<2x32xf32>
    %85 = arith.mulf %81, %30 : vector<2x32xf32>
    %86 = arith.mulf %80, %84 : vector<2x32xf32>
    %87 = arith.addf %85, %86 : vector<2x32xf32>
    %88 = math.tanh %87 : vector<2x32xf32>
    %89 = arith.mulf %82, %88 : vector<2x32xf32>
    %90 = vector.extract_strided_slice %20 {offsets = [4, 0], sizes = [2, 128], strides = [1, 1]} : vector<16x128xf32> to vector<2x128xf32>
    %91 = arith.truncf %69 : vector<2x32xf32> to vector<2x32xbf16>
    %cst_34 = arith.constant dense<0.000000e+00> : vector<2x128xf32>
    %92 = tpu.matmul %91, %21, %cst_34 {dimension_numbers = #tpu.dot_dimension_numbers<[1], [0], [0], [1], [0, 0, 1, 1], [], []>} : vector<2x32xbf16>, vector<32x128xbf16>, vector<2x128xf32> -> vector<2x128xf32>
    %93 = arith.addf %90, %92 : vector<2x128xf32>
    %94 = arith.negf %93 : vector<2x128xf32>
    %95 = math.exp %94 : vector<2x128xf32>
    %cst_35 = arith.constant 1.000000e+00 : f32
    %96 = vector.broadcast %cst_35 : f32 to vector<2x128xf32>
    %97 = arith.addf %96, %95 : vector<2x128xf32>
    %98 = arith.divf %96, %97 : vector<2x128xf32>
    %99 = vector.extract_strided_slice %98 {offsets = [0, 0], sizes = [2, 32], strides = [1, 1]} : vector<2x128xf32> to vector<2x32xf32>
    %100 = vector.extract_strided_slice %98 {offsets = [0, 32], sizes = [2, 32], strides = [1, 1]} : vector<2x128xf32> to vector<2x32xf32>
    %101 = vector.extract_strided_slice %98 {offsets = [0, 96], sizes = [2, 32], strides = [1, 1]} : vector<2x128xf32> to vector<2x32xf32>
    %102 = vector.extract_strided_slice %93 {offsets = [0, 64], sizes = [2, 32], strides = [1, 1]} : vector<2x128xf32> to vector<2x32xf32>
    %103 = math.tanh %102 : vector<2x32xf32>
    %104 = arith.mulf %100, %67 : vector<2x32xf32>
    %105 = arith.mulf %99, %103 : vector<2x32xf32>
    %106 = arith.addf %104, %105 : vector<2x32xf32>
    %107 = math.tanh %106 : vector<2x32xf32>
    %108 = arith.mulf %101, %107 : vector<2x32xf32>
    %109 = tpu.concatenate %69, %89 in 1 : vector<2x32xf32>, vector<2x32xf32> -> vector<2x64xf32>
    %110 = arith.truncf %109 : vector<2x64xf32> to vector<2x64xbf16>
    %cst_36 = arith.constant dense<0.000000e+00> : vector<2x128xf32>
    %111 = tpu.matmul %110, %22, %cst_36 {dimension_numbers = #tpu.dot_dimension_numbers<[1], [0], [0], [1], [0, 0, 1, 1], [], []>} : vector<2x64xbf16>, vector<64x128xbf16>, vector<2x128xf32> -> vector<2x128xf32>
    %112 = vector.broadcast %24 : vector<1x128xf32> to vector<2x128xf32>
    %113 = arith.addf %111, %112 : vector<2x128xf32>
    %114 = arith.negf %113 : vector<2x128xf32>
    %115 = math.exp %114 : vector<2x128xf32>
    %cst_37 = arith.constant 1.000000e+00 : f32
    %116 = vector.broadcast %cst_37 : f32 to vector<2x128xf32>
    %117 = arith.addf %116, %115 : vector<2x128xf32>
    %118 = arith.divf %116, %117 : vector<2x128xf32>
    %119 = vector.extract_strided_slice %118 {offsets = [0, 0], sizes = [2, 32], strides = [1, 1]} : vector<2x128xf32> to vector<2x32xf32>
    %120 = vector.extract_strided_slice %118 {offsets = [0, 32], sizes = [2, 32], strides = [1, 1]} : vector<2x128xf32> to vector<2x32xf32>
    %121 = vector.extract_strided_slice %118 {offsets = [0, 96], sizes = [2, 32], strides = [1, 1]} : vector<2x128xf32> to vector<2x32xf32>
    %122 = vector.extract_strided_slice %113 {offsets = [0, 64], sizes = [2, 32], strides = [1, 1]} : vector<2x128xf32> to vector<2x32xf32>
    %123 = math.tanh %122 : vector<2x32xf32>
    %124 = arith.mulf %120, %87 : vector<2x32xf32>
    %125 = arith.mulf %119, %123 : vector<2x32xf32>
    %126 = arith.addf %124, %125 : vector<2x32xf32>
    %127 = math.tanh %126 : vector<2x32xf32>
    %128 = arith.mulf %121, %127 : vector<2x32xf32>
    %129 = tpu.concatenate %89, %28 in 1 : vector<2x32xf32>, vector<2x32xf32> -> vector<2x64xf32>
    %130 = arith.truncf %129 : vector<2x64xf32> to vector<2x64xbf16>
    %cst_38 = arith.constant dense<0.000000e+00> : vector<2x128xf32>
    %131 = tpu.matmul %130, %23, %cst_38 {dimension_numbers = #tpu.dot_dimension_numbers<[1], [0], [0], [1], [0, 0, 1, 1], [], []>} : vector<2x64xbf16>, vector<64x128xbf16>, vector<2x128xf32> -> vector<2x128xf32>
    %132 = vector.broadcast %25 : vector<1x128xf32> to vector<2x128xf32>
    %133 = arith.addf %131, %132 : vector<2x128xf32>
    %134 = arith.negf %133 : vector<2x128xf32>
    %135 = math.exp %134 : vector<2x128xf32>
    %cst_39 = arith.constant 1.000000e+00 : f32
    %136 = vector.broadcast %cst_39 : f32 to vector<2x128xf32>
    %137 = arith.addf %136, %135 : vector<2x128xf32>
    %138 = arith.divf %136, %137 : vector<2x128xf32>
    %139 = vector.extract_strided_slice %138 {offsets = [0, 0], sizes = [2, 32], strides = [1, 1]} : vector<2x128xf32> to vector<2x32xf32>
    %140 = vector.extract_strided_slice %138 {offsets = [0, 32], sizes = [2, 32], strides = [1, 1]} : vector<2x128xf32> to vector<2x32xf32>
    %141 = vector.extract_strided_slice %138 {offsets = [0, 96], sizes = [2, 32], strides = [1, 1]} : vector<2x128xf32> to vector<2x32xf32>
    %142 = vector.extract_strided_slice %133 {offsets = [0, 64], sizes = [2, 32], strides = [1, 1]} : vector<2x128xf32> to vector<2x32xf32>
    %143 = math.tanh %142 : vector<2x32xf32>
    %144 = arith.mulf %140, %31 : vector<2x32xf32>
    %145 = arith.mulf %139, %143 : vector<2x32xf32>
    %146 = arith.addf %144, %145 : vector<2x32xf32>
    %147 = math.tanh %146 : vector<2x32xf32>
    %148 = arith.mulf %141, %147 : vector<2x32xf32>
    %149 = vector.extract_strided_slice %20 {offsets = [6, 0], sizes = [2, 128], strides = [1, 1]} : vector<16x128xf32> to vector<2x128xf32>
    %150 = arith.truncf %108 : vector<2x32xf32> to vector<2x32xbf16>
    %cst_40 = arith.constant dense<0.000000e+00> : vector<2x128xf32>
    %151 = tpu.matmul %150, %21, %cst_40 {dimension_numbers = #tpu.dot_dimension_numbers<[1], [0], [0], [1], [0, 0, 1, 1], [], []>} : vector<2x32xbf16>, vector<32x128xbf16>, vector<2x128xf32> -> vector<2x128xf32>
    %152 = arith.addf %149, %151 : vector<2x128xf32>
    %153 = arith.negf %152 : vector<2x128xf32>
    %154 = math.exp %153 : vector<2x128xf32>
    %cst_41 = arith.constant 1.000000e+00 : f32
    %155 = vector.broadcast %cst_41 : f32 to vector<2x128xf32>
    %156 = arith.addf %155, %154 : vector<2x128xf32>
    %157 = arith.divf %155, %156 : vector<2x128xf32>
    %158 = vector.extract_strided_slice %157 {offsets = [0, 0], sizes = [2, 32], strides = [1, 1]} : vector<2x128xf32> to vector<2x32xf32>
    %159 = vector.extract_strided_slice %157 {offsets = [0, 32], sizes = [2, 32], strides = [1, 1]} : vector<2x128xf32> to vector<2x32xf32>
    %160 = vector.extract_strided_slice %157 {offsets = [0, 96], sizes = [2, 32], strides = [1, 1]} : vector<2x128xf32> to vector<2x32xf32>
    %161 = vector.extract_strided_slice %152 {offsets = [0, 64], sizes = [2, 32], strides = [1, 1]} : vector<2x128xf32> to vector<2x32xf32>
    %162 = math.tanh %161 : vector<2x32xf32>
    %163 = arith.mulf %159, %106 : vector<2x32xf32>
    %164 = arith.mulf %158, %162 : vector<2x32xf32>
    %165 = arith.addf %163, %164 : vector<2x32xf32>
    %166 = math.tanh %165 : vector<2x32xf32>
    %167 = arith.mulf %160, %166 : vector<2x32xf32>
    %168 = tpu.concatenate %108, %128 in 1 : vector<2x32xf32>, vector<2x32xf32> -> vector<2x64xf32>
    %169 = arith.truncf %168 : vector<2x64xf32> to vector<2x64xbf16>
    %cst_42 = arith.constant dense<0.000000e+00> : vector<2x128xf32>
    %170 = tpu.matmul %169, %22, %cst_42 {dimension_numbers = #tpu.dot_dimension_numbers<[1], [0], [0], [1], [0, 0, 1, 1], [], []>} : vector<2x64xbf16>, vector<64x128xbf16>, vector<2x128xf32> -> vector<2x128xf32>
    %171 = vector.broadcast %24 : vector<1x128xf32> to vector<2x128xf32>
    %172 = arith.addf %170, %171 : vector<2x128xf32>
    %173 = arith.negf %172 : vector<2x128xf32>
    %174 = math.exp %173 : vector<2x128xf32>
    %cst_43 = arith.constant 1.000000e+00 : f32
    %175 = vector.broadcast %cst_43 : f32 to vector<2x128xf32>
    %176 = arith.addf %175, %174 : vector<2x128xf32>
    %177 = arith.divf %175, %176 : vector<2x128xf32>
    %178 = vector.extract_strided_slice %177 {offsets = [0, 0], sizes = [2, 32], strides = [1, 1]} : vector<2x128xf32> to vector<2x32xf32>
    %179 = vector.extract_strided_slice %177 {offsets = [0, 32], sizes = [2, 32], strides = [1, 1]} : vector<2x128xf32> to vector<2x32xf32>
    %180 = vector.extract_strided_slice %177 {offsets = [0, 96], sizes = [2, 32], strides = [1, 1]} : vector<2x128xf32> to vector<2x32xf32>
    %181 = vector.extract_strided_slice %172 {offsets = [0, 64], sizes = [2, 32], strides = [1, 1]} : vector<2x128xf32> to vector<2x32xf32>
    %182 = math.tanh %181 : vector<2x32xf32>
    %183 = arith.mulf %179, %126 : vector<2x32xf32>
    %184 = arith.mulf %178, %182 : vector<2x32xf32>
    %185 = arith.addf %183, %184 : vector<2x32xf32>
    %186 = math.tanh %185 : vector<2x32xf32>
    %187 = arith.mulf %180, %186 : vector<2x32xf32>
    %188 = tpu.concatenate %128, %148 in 1 : vector<2x32xf32>, vector<2x32xf32> -> vector<2x64xf32>
    %189 = arith.truncf %188 : vector<2x64xf32> to vector<2x64xbf16>
    %cst_44 = arith.constant dense<0.000000e+00> : vector<2x128xf32>
    %190 = tpu.matmul %189, %23, %cst_44 {dimension_numbers = #tpu.dot_dimension_numbers<[1], [0], [0], [1], [0, 0, 1, 1], [], []>} : vector<2x64xbf16>, vector<64x128xbf16>, vector<2x128xf32> -> vector<2x128xf32>
    %191 = vector.broadcast %25 : vector<1x128xf32> to vector<2x128xf32>
    %192 = arith.addf %190, %191 : vector<2x128xf32>
    %193 = arith.negf %192 : vector<2x128xf32>
    %194 = math.exp %193 : vector<2x128xf32>
    %cst_45 = arith.constant 1.000000e+00 : f32
    %195 = vector.broadcast %cst_45 : f32 to vector<2x128xf32>
    %196 = arith.addf %195, %194 : vector<2x128xf32>
    %197 = arith.divf %195, %196 : vector<2x128xf32>
    %198 = vector.extract_strided_slice %197 {offsets = [0, 0], sizes = [2, 32], strides = [1, 1]} : vector<2x128xf32> to vector<2x32xf32>
    %199 = vector.extract_strided_slice %197 {offsets = [0, 32], sizes = [2, 32], strides = [1, 1]} : vector<2x128xf32> to vector<2x32xf32>
    %200 = vector.extract_strided_slice %197 {offsets = [0, 96], sizes = [2, 32], strides = [1, 1]} : vector<2x128xf32> to vector<2x32xf32>
    %201 = vector.extract_strided_slice %192 {offsets = [0, 64], sizes = [2, 32], strides = [1, 1]} : vector<2x128xf32> to vector<2x32xf32>
    %202 = math.tanh %201 : vector<2x32xf32>
    %203 = arith.mulf %199, %146 : vector<2x32xf32>
    %204 = arith.mulf %198, %202 : vector<2x32xf32>
    %205 = arith.addf %203, %204 : vector<2x32xf32>
    %206 = math.tanh %205 : vector<2x32xf32>
    %207 = arith.mulf %200, %206 : vector<2x32xf32>
    %208 = vector.extract_strided_slice %20 {offsets = [8, 0], sizes = [2, 128], strides = [1, 1]} : vector<16x128xf32> to vector<2x128xf32>
    %209 = arith.truncf %167 : vector<2x32xf32> to vector<2x32xbf16>
    %cst_46 = arith.constant dense<0.000000e+00> : vector<2x128xf32>
    %210 = tpu.matmul %209, %21, %cst_46 {dimension_numbers = #tpu.dot_dimension_numbers<[1], [0], [0], [1], [0, 0, 1, 1], [], []>} : vector<2x32xbf16>, vector<32x128xbf16>, vector<2x128xf32> -> vector<2x128xf32>
    %211 = arith.addf %208, %210 : vector<2x128xf32>
    %212 = arith.negf %211 : vector<2x128xf32>
    %213 = math.exp %212 : vector<2x128xf32>
    %cst_47 = arith.constant 1.000000e+00 : f32
    %214 = vector.broadcast %cst_47 : f32 to vector<2x128xf32>
    %215 = arith.addf %214, %213 : vector<2x128xf32>
    %216 = arith.divf %214, %215 : vector<2x128xf32>
    %217 = vector.extract_strided_slice %216 {offsets = [0, 0], sizes = [2, 32], strides = [1, 1]} : vector<2x128xf32> to vector<2x32xf32>
    %218 = vector.extract_strided_slice %216 {offsets = [0, 32], sizes = [2, 32], strides = [1, 1]} : vector<2x128xf32> to vector<2x32xf32>
    %219 = vector.extract_strided_slice %216 {offsets = [0, 96], sizes = [2, 32], strides = [1, 1]} : vector<2x128xf32> to vector<2x32xf32>
    %220 = vector.extract_strided_slice %211 {offsets = [0, 64], sizes = [2, 32], strides = [1, 1]} : vector<2x128xf32> to vector<2x32xf32>
    %221 = math.tanh %220 : vector<2x32xf32>
    %222 = arith.mulf %218, %165 : vector<2x32xf32>
    %223 = arith.mulf %217, %221 : vector<2x32xf32>
    %224 = arith.addf %222, %223 : vector<2x32xf32>
    %225 = math.tanh %224 : vector<2x32xf32>
    %226 = arith.mulf %219, %225 : vector<2x32xf32>
    %227 = tpu.concatenate %167, %187 in 1 : vector<2x32xf32>, vector<2x32xf32> -> vector<2x64xf32>
    %228 = arith.truncf %227 : vector<2x64xf32> to vector<2x64xbf16>
    %cst_48 = arith.constant dense<0.000000e+00> : vector<2x128xf32>
    %229 = tpu.matmul %228, %22, %cst_48 {dimension_numbers = #tpu.dot_dimension_numbers<[1], [0], [0], [1], [0, 0, 1, 1], [], []>} : vector<2x64xbf16>, vector<64x128xbf16>, vector<2x128xf32> -> vector<2x128xf32>
    %230 = vector.broadcast %24 : vector<1x128xf32> to vector<2x128xf32>
    %231 = arith.addf %229, %230 : vector<2x128xf32>
    %232 = arith.negf %231 : vector<2x128xf32>
    %233 = math.exp %232 : vector<2x128xf32>
    %cst_49 = arith.constant 1.000000e+00 : f32
    %234 = vector.broadcast %cst_49 : f32 to vector<2x128xf32>
    %235 = arith.addf %234, %233 : vector<2x128xf32>
    %236 = arith.divf %234, %235 : vector<2x128xf32>
    %237 = vector.extract_strided_slice %236 {offsets = [0, 0], sizes = [2, 32], strides = [1, 1]} : vector<2x128xf32> to vector<2x32xf32>
    %238 = vector.extract_strided_slice %236 {offsets = [0, 32], sizes = [2, 32], strides = [1, 1]} : vector<2x128xf32> to vector<2x32xf32>
    %239 = vector.extract_strided_slice %236 {offsets = [0, 96], sizes = [2, 32], strides = [1, 1]} : vector<2x128xf32> to vector<2x32xf32>
    %240 = vector.extract_strided_slice %231 {offsets = [0, 64], sizes = [2, 32], strides = [1, 1]} : vector<2x128xf32> to vector<2x32xf32>
    %241 = math.tanh %240 : vector<2x32xf32>
    %242 = arith.mulf %238, %185 : vector<2x32xf32>
    %243 = arith.mulf %237, %241 : vector<2x32xf32>
    %244 = arith.addf %242, %243 : vector<2x32xf32>
    %245 = math.tanh %244 : vector<2x32xf32>
    %246 = arith.mulf %239, %245 : vector<2x32xf32>
    %247 = tpu.concatenate %187, %207 in 1 : vector<2x32xf32>, vector<2x32xf32> -> vector<2x64xf32>
    %248 = arith.truncf %247 : vector<2x64xf32> to vector<2x64xbf16>
    %cst_50 = arith.constant dense<0.000000e+00> : vector<2x128xf32>
    %249 = tpu.matmul %248, %23, %cst_50 {dimension_numbers = #tpu.dot_dimension_numbers<[1], [0], [0], [1], [0, 0, 1, 1], [], []>} : vector<2x64xbf16>, vector<64x128xbf16>, vector<2x128xf32> -> vector<2x128xf32>
    %250 = vector.broadcast %25 : vector<1x128xf32> to vector<2x128xf32>
    %251 = arith.addf %249, %250 : vector<2x128xf32>
    %252 = arith.negf %251 : vector<2x128xf32>
    %253 = math.exp %252 : vector<2x128xf32>
    %cst_51 = arith.constant 1.000000e+00 : f32
    %254 = vector.broadcast %cst_51 : f32 to vector<2x128xf32>
    %255 = arith.addf %254, %253 : vector<2x128xf32>
    %256 = arith.divf %254, %255 : vector<2x128xf32>
    %257 = vector.extract_strided_slice %256 {offsets = [0, 0], sizes = [2, 32], strides = [1, 1]} : vector<2x128xf32> to vector<2x32xf32>
    %258 = vector.extract_strided_slice %256 {offsets = [0, 32], sizes = [2, 32], strides = [1, 1]} : vector<2x128xf32> to vector<2x32xf32>
    %259 = vector.extract_strided_slice %256 {offsets = [0, 96], sizes = [2, 32], strides = [1, 1]} : vector<2x128xf32> to vector<2x32xf32>
    %260 = vector.extract_strided_slice %251 {offsets = [0, 64], sizes = [2, 32], strides = [1, 1]} : vector<2x128xf32> to vector<2x32xf32>
    %261 = math.tanh %260 : vector<2x32xf32>
    %262 = arith.mulf %258, %205 : vector<2x32xf32>
    %263 = arith.mulf %257, %261 : vector<2x32xf32>
    %264 = arith.addf %262, %263 : vector<2x32xf32>
    %265 = math.tanh %264 : vector<2x32xf32>
    %266 = arith.mulf %259, %265 : vector<2x32xf32>
    %267 = vector.extract_strided_slice %20 {offsets = [10, 0], sizes = [2, 128], strides = [1, 1]} : vector<16x128xf32> to vector<2x128xf32>
    %268 = arith.truncf %226 : vector<2x32xf32> to vector<2x32xbf16>
    %cst_52 = arith.constant dense<0.000000e+00> : vector<2x128xf32>
    %269 = tpu.matmul %268, %21, %cst_52 {dimension_numbers = #tpu.dot_dimension_numbers<[1], [0], [0], [1], [0, 0, 1, 1], [], []>} : vector<2x32xbf16>, vector<32x128xbf16>, vector<2x128xf32> -> vector<2x128xf32>
    %270 = arith.addf %267, %269 : vector<2x128xf32>
    %271 = arith.negf %270 : vector<2x128xf32>
    %272 = math.exp %271 : vector<2x128xf32>
    %cst_53 = arith.constant 1.000000e+00 : f32
    %273 = vector.broadcast %cst_53 : f32 to vector<2x128xf32>
    %274 = arith.addf %273, %272 : vector<2x128xf32>
    %275 = arith.divf %273, %274 : vector<2x128xf32>
    %276 = vector.extract_strided_slice %275 {offsets = [0, 0], sizes = [2, 32], strides = [1, 1]} : vector<2x128xf32> to vector<2x32xf32>
    %277 = vector.extract_strided_slice %275 {offsets = [0, 32], sizes = [2, 32], strides = [1, 1]} : vector<2x128xf32> to vector<2x32xf32>
    %278 = vector.extract_strided_slice %275 {offsets = [0, 96], sizes = [2, 32], strides = [1, 1]} : vector<2x128xf32> to vector<2x32xf32>
    %279 = vector.extract_strided_slice %270 {offsets = [0, 64], sizes = [2, 32], strides = [1, 1]} : vector<2x128xf32> to vector<2x32xf32>
    %280 = math.tanh %279 : vector<2x32xf32>
    %281 = arith.mulf %277, %224 : vector<2x32xf32>
    %282 = arith.mulf %276, %280 : vector<2x32xf32>
    %283 = arith.addf %281, %282 : vector<2x32xf32>
    %284 = math.tanh %283 : vector<2x32xf32>
    %285 = arith.mulf %278, %284 : vector<2x32xf32>
    %286 = tpu.concatenate %226, %246 in 1 : vector<2x32xf32>, vector<2x32xf32> -> vector<2x64xf32>
    %287 = arith.truncf %286 : vector<2x64xf32> to vector<2x64xbf16>
    %cst_54 = arith.constant dense<0.000000e+00> : vector<2x128xf32>
    %288 = tpu.matmul %287, %22, %cst_54 {dimension_numbers = #tpu.dot_dimension_numbers<[1], [0], [0], [1], [0, 0, 1, 1], [], []>} : vector<2x64xbf16>, vector<64x128xbf16>, vector<2x128xf32> -> vector<2x128xf32>
    %289 = vector.broadcast %24 : vector<1x128xf32> to vector<2x128xf32>
    %290 = arith.addf %288, %289 : vector<2x128xf32>
    %291 = arith.negf %290 : vector<2x128xf32>
    %292 = math.exp %291 : vector<2x128xf32>
    %cst_55 = arith.constant 1.000000e+00 : f32
    %293 = vector.broadcast %cst_55 : f32 to vector<2x128xf32>
    %294 = arith.addf %293, %292 : vector<2x128xf32>
    %295 = arith.divf %293, %294 : vector<2x128xf32>
    %296 = vector.extract_strided_slice %295 {offsets = [0, 0], sizes = [2, 32], strides = [1, 1]} : vector<2x128xf32> to vector<2x32xf32>
    %297 = vector.extract_strided_slice %295 {offsets = [0, 32], sizes = [2, 32], strides = [1, 1]} : vector<2x128xf32> to vector<2x32xf32>
    %298 = vector.extract_strided_slice %295 {offsets = [0, 96], sizes = [2, 32], strides = [1, 1]} : vector<2x128xf32> to vector<2x32xf32>
    %299 = vector.extract_strided_slice %290 {offsets = [0, 64], sizes = [2, 32], strides = [1, 1]} : vector<2x128xf32> to vector<2x32xf32>
    %300 = math.tanh %299 : vector<2x32xf32>
    %301 = arith.mulf %297, %244 : vector<2x32xf32>
    %302 = arith.mulf %296, %300 : vector<2x32xf32>
    %303 = arith.addf %301, %302 : vector<2x32xf32>
    %304 = math.tanh %303 : vector<2x32xf32>
    %305 = arith.mulf %298, %304 : vector<2x32xf32>
    %306 = tpu.concatenate %246, %266 in 1 : vector<2x32xf32>, vector<2x32xf32> -> vector<2x64xf32>
    %307 = arith.truncf %306 : vector<2x64xf32> to vector<2x64xbf16>
    %cst_56 = arith.constant dense<0.000000e+00> : vector<2x128xf32>
    %308 = tpu.matmul %307, %23, %cst_56 {dimension_numbers = #tpu.dot_dimension_numbers<[1], [0], [0], [1], [0, 0, 1, 1], [], []>} : vector<2x64xbf16>, vector<64x128xbf16>, vector<2x128xf32> -> vector<2x128xf32>
    %309 = vector.broadcast %25 : vector<1x128xf32> to vector<2x128xf32>
    %310 = arith.addf %308, %309 : vector<2x128xf32>
    %311 = arith.negf %310 : vector<2x128xf32>
    %312 = math.exp %311 : vector<2x128xf32>
    %cst_57 = arith.constant 1.000000e+00 : f32
    %313 = vector.broadcast %cst_57 : f32 to vector<2x128xf32>
    %314 = arith.addf %313, %312 : vector<2x128xf32>
    %315 = arith.divf %313, %314 : vector<2x128xf32>
    %316 = vector.extract_strided_slice %315 {offsets = [0, 0], sizes = [2, 32], strides = [1, 1]} : vector<2x128xf32> to vector<2x32xf32>
    %317 = vector.extract_strided_slice %315 {offsets = [0, 32], sizes = [2, 32], strides = [1, 1]} : vector<2x128xf32> to vector<2x32xf32>
    %318 = vector.extract_strided_slice %315 {offsets = [0, 96], sizes = [2, 32], strides = [1, 1]} : vector<2x128xf32> to vector<2x32xf32>
    %319 = vector.extract_strided_slice %310 {offsets = [0, 64], sizes = [2, 32], strides = [1, 1]} : vector<2x128xf32> to vector<2x32xf32>
    %320 = math.tanh %319 : vector<2x32xf32>
    %321 = arith.mulf %317, %264 : vector<2x32xf32>
    %322 = arith.mulf %316, %320 : vector<2x32xf32>
    %323 = arith.addf %321, %322 : vector<2x32xf32>
    %324 = math.tanh %323 : vector<2x32xf32>
    %325 = arith.mulf %318, %324 : vector<2x32xf32>
    %326 = vector.extract_strided_slice %20 {offsets = [12, 0], sizes = [2, 128], strides = [1, 1]} : vector<16x128xf32> to vector<2x128xf32>
    %327 = arith.truncf %285 : vector<2x32xf32> to vector<2x32xbf16>
    %cst_58 = arith.constant dense<0.000000e+00> : vector<2x128xf32>
    %328 = tpu.matmul %327, %21, %cst_58 {dimension_numbers = #tpu.dot_dimension_numbers<[1], [0], [0], [1], [0, 0, 1, 1], [], []>} : vector<2x32xbf16>, vector<32x128xbf16>, vector<2x128xf32> -> vector<2x128xf32>
    %329 = arith.addf %326, %328 : vector<2x128xf32>
    %330 = arith.negf %329 : vector<2x128xf32>
    %331 = math.exp %330 : vector<2x128xf32>
    %cst_59 = arith.constant 1.000000e+00 : f32
    %332 = vector.broadcast %cst_59 : f32 to vector<2x128xf32>
    %333 = arith.addf %332, %331 : vector<2x128xf32>
    %334 = arith.divf %332, %333 : vector<2x128xf32>
    %335 = vector.extract_strided_slice %334 {offsets = [0, 0], sizes = [2, 32], strides = [1, 1]} : vector<2x128xf32> to vector<2x32xf32>
    %336 = vector.extract_strided_slice %334 {offsets = [0, 32], sizes = [2, 32], strides = [1, 1]} : vector<2x128xf32> to vector<2x32xf32>
    %337 = vector.extract_strided_slice %334 {offsets = [0, 96], sizes = [2, 32], strides = [1, 1]} : vector<2x128xf32> to vector<2x32xf32>
    %338 = vector.extract_strided_slice %329 {offsets = [0, 64], sizes = [2, 32], strides = [1, 1]} : vector<2x128xf32> to vector<2x32xf32>
    %339 = math.tanh %338 : vector<2x32xf32>
    %340 = arith.mulf %336, %283 : vector<2x32xf32>
    %341 = arith.mulf %335, %339 : vector<2x32xf32>
    %342 = arith.addf %340, %341 : vector<2x32xf32>
    %343 = math.tanh %342 : vector<2x32xf32>
    %344 = arith.mulf %337, %343 : vector<2x32xf32>
    %345 = tpu.concatenate %285, %305 in 1 : vector<2x32xf32>, vector<2x32xf32> -> vector<2x64xf32>
    %346 = arith.truncf %345 : vector<2x64xf32> to vector<2x64xbf16>
    %cst_60 = arith.constant dense<0.000000e+00> : vector<2x128xf32>
    %347 = tpu.matmul %346, %22, %cst_60 {dimension_numbers = #tpu.dot_dimension_numbers<[1], [0], [0], [1], [0, 0, 1, 1], [], []>} : vector<2x64xbf16>, vector<64x128xbf16>, vector<2x128xf32> -> vector<2x128xf32>
    %348 = vector.broadcast %24 : vector<1x128xf32> to vector<2x128xf32>
    %349 = arith.addf %347, %348 : vector<2x128xf32>
    %350 = arith.negf %349 : vector<2x128xf32>
    %351 = math.exp %350 : vector<2x128xf32>
    %cst_61 = arith.constant 1.000000e+00 : f32
    %352 = vector.broadcast %cst_61 : f32 to vector<2x128xf32>
    %353 = arith.addf %352, %351 : vector<2x128xf32>
    %354 = arith.divf %352, %353 : vector<2x128xf32>
    %355 = vector.extract_strided_slice %354 {offsets = [0, 0], sizes = [2, 32], strides = [1, 1]} : vector<2x128xf32> to vector<2x32xf32>
    %356 = vector.extract_strided_slice %354 {offsets = [0, 32], sizes = [2, 32], strides = [1, 1]} : vector<2x128xf32> to vector<2x32xf32>
    %357 = vector.extract_strided_slice %354 {offsets = [0, 96], sizes = [2, 32], strides = [1, 1]} : vector<2x128xf32> to vector<2x32xf32>
    %358 = vector.extract_strided_slice %349 {offsets = [0, 64], sizes = [2, 32], strides = [1, 1]} : vector<2x128xf32> to vector<2x32xf32>
    %359 = math.tanh %358 : vector<2x32xf32>
    %360 = arith.mulf %356, %303 : vector<2x32xf32>
    %361 = arith.mulf %355, %359 : vector<2x32xf32>
    %362 = arith.addf %360, %361 : vector<2x32xf32>
    %363 = math.tanh %362 : vector<2x32xf32>
    %364 = arith.mulf %357, %363 : vector<2x32xf32>
    %365 = tpu.concatenate %305, %325 in 1 : vector<2x32xf32>, vector<2x32xf32> -> vector<2x64xf32>
    %366 = arith.truncf %365 : vector<2x64xf32> to vector<2x64xbf16>
    %cst_62 = arith.constant dense<0.000000e+00> : vector<2x128xf32>
    %367 = tpu.matmul %366, %23, %cst_62 {dimension_numbers = #tpu.dot_dimension_numbers<[1], [0], [0], [1], [0, 0, 1, 1], [], []>} : vector<2x64xbf16>, vector<64x128xbf16>, vector<2x128xf32> -> vector<2x128xf32>
    %368 = vector.broadcast %25 : vector<1x128xf32> to vector<2x128xf32>
    %369 = arith.addf %367, %368 : vector<2x128xf32>
    %370 = arith.negf %369 : vector<2x128xf32>
    %371 = math.exp %370 : vector<2x128xf32>
    %cst_63 = arith.constant 1.000000e+00 : f32
    %372 = vector.broadcast %cst_63 : f32 to vector<2x128xf32>
    %373 = arith.addf %372, %371 : vector<2x128xf32>
    %374 = arith.divf %372, %373 : vector<2x128xf32>
    %375 = vector.extract_strided_slice %374 {offsets = [0, 0], sizes = [2, 32], strides = [1, 1]} : vector<2x128xf32> to vector<2x32xf32>
    %376 = vector.extract_strided_slice %374 {offsets = [0, 32], sizes = [2, 32], strides = [1, 1]} : vector<2x128xf32> to vector<2x32xf32>
    %377 = vector.extract_strided_slice %374 {offsets = [0, 96], sizes = [2, 32], strides = [1, 1]} : vector<2x128xf32> to vector<2x32xf32>
    %378 = vector.extract_strided_slice %369 {offsets = [0, 64], sizes = [2, 32], strides = [1, 1]} : vector<2x128xf32> to vector<2x32xf32>
    %379 = math.tanh %378 : vector<2x32xf32>
    %380 = arith.mulf %376, %323 : vector<2x32xf32>
    %381 = arith.mulf %375, %379 : vector<2x32xf32>
    %382 = arith.addf %380, %381 : vector<2x32xf32>
    %383 = math.tanh %382 : vector<2x32xf32>
    %384 = arith.mulf %377, %383 : vector<2x32xf32>
    %385 = vector.extract_strided_slice %20 {offsets = [14, 0], sizes = [2, 128], strides = [1, 1]} : vector<16x128xf32> to vector<2x128xf32>
    %386 = arith.truncf %344 : vector<2x32xf32> to vector<2x32xbf16>
    %cst_64 = arith.constant dense<0.000000e+00> : vector<2x128xf32>
    %387 = tpu.matmul %386, %21, %cst_64 {dimension_numbers = #tpu.dot_dimension_numbers<[1], [0], [0], [1], [0, 0, 1, 1], [], []>} : vector<2x32xbf16>, vector<32x128xbf16>, vector<2x128xf32> -> vector<2x128xf32>
    %388 = arith.addf %385, %387 : vector<2x128xf32>
    %389 = arith.negf %388 : vector<2x128xf32>
    %390 = math.exp %389 : vector<2x128xf32>
    %cst_65 = arith.constant 1.000000e+00 : f32
    %391 = vector.broadcast %cst_65 : f32 to vector<2x128xf32>
    %392 = arith.addf %391, %390 : vector<2x128xf32>
    %393 = arith.divf %391, %392 : vector<2x128xf32>
    %394 = vector.extract_strided_slice %393 {offsets = [0, 0], sizes = [2, 32], strides = [1, 1]} : vector<2x128xf32> to vector<2x32xf32>
    %395 = vector.extract_strided_slice %393 {offsets = [0, 32], sizes = [2, 32], strides = [1, 1]} : vector<2x128xf32> to vector<2x32xf32>
    %396 = vector.extract_strided_slice %393 {offsets = [0, 96], sizes = [2, 32], strides = [1, 1]} : vector<2x128xf32> to vector<2x32xf32>
    %397 = vector.extract_strided_slice %388 {offsets = [0, 64], sizes = [2, 32], strides = [1, 1]} : vector<2x128xf32> to vector<2x32xf32>
    %398 = math.tanh %397 : vector<2x32xf32>
    %399 = arith.mulf %395, %342 : vector<2x32xf32>
    %400 = arith.mulf %394, %398 : vector<2x32xf32>
    %401 = arith.addf %399, %400 : vector<2x32xf32>
    %402 = math.tanh %401 : vector<2x32xf32>
    %403 = arith.mulf %396, %402 : vector<2x32xf32>
    %404 = tpu.concatenate %344, %364 in 1 : vector<2x32xf32>, vector<2x32xf32> -> vector<2x64xf32>
    %405 = arith.truncf %404 : vector<2x64xf32> to vector<2x64xbf16>
    %cst_66 = arith.constant dense<0.000000e+00> : vector<2x128xf32>
    %406 = tpu.matmul %405, %22, %cst_66 {dimension_numbers = #tpu.dot_dimension_numbers<[1], [0], [0], [1], [0, 0, 1, 1], [], []>} : vector<2x64xbf16>, vector<64x128xbf16>, vector<2x128xf32> -> vector<2x128xf32>
    %407 = vector.broadcast %24 : vector<1x128xf32> to vector<2x128xf32>
    %408 = arith.addf %406, %407 : vector<2x128xf32>
    %409 = arith.negf %408 : vector<2x128xf32>
    %410 = math.exp %409 : vector<2x128xf32>
    %cst_67 = arith.constant 1.000000e+00 : f32
    %411 = vector.broadcast %cst_67 : f32 to vector<2x128xf32>
    %412 = arith.addf %411, %410 : vector<2x128xf32>
    %413 = arith.divf %411, %412 : vector<2x128xf32>
    %414 = vector.extract_strided_slice %413 {offsets = [0, 0], sizes = [2, 32], strides = [1, 1]} : vector<2x128xf32> to vector<2x32xf32>
    %415 = vector.extract_strided_slice %413 {offsets = [0, 32], sizes = [2, 32], strides = [1, 1]} : vector<2x128xf32> to vector<2x32xf32>
    %416 = vector.extract_strided_slice %413 {offsets = [0, 96], sizes = [2, 32], strides = [1, 1]} : vector<2x128xf32> to vector<2x32xf32>
    %417 = vector.extract_strided_slice %408 {offsets = [0, 64], sizes = [2, 32], strides = [1, 1]} : vector<2x128xf32> to vector<2x32xf32>
    %418 = math.tanh %417 : vector<2x32xf32>
    %419 = arith.mulf %415, %362 : vector<2x32xf32>
    %420 = arith.mulf %414, %418 : vector<2x32xf32>
    %421 = arith.addf %419, %420 : vector<2x32xf32>
    %422 = math.tanh %421 : vector<2x32xf32>
    %423 = arith.mulf %416, %422 : vector<2x32xf32>
    %424 = tpu.concatenate %364, %384 in 1 : vector<2x32xf32>, vector<2x32xf32> -> vector<2x64xf32>
    %425 = arith.truncf %424 : vector<2x64xf32> to vector<2x64xbf16>
    %cst_68 = arith.constant dense<0.000000e+00> : vector<2x128xf32>
    %426 = tpu.matmul %425, %23, %cst_68 {dimension_numbers = #tpu.dot_dimension_numbers<[1], [0], [0], [1], [0, 0, 1, 1], [], []>} : vector<2x64xbf16>, vector<64x128xbf16>, vector<2x128xf32> -> vector<2x128xf32>
    %427 = vector.broadcast %25 : vector<1x128xf32> to vector<2x128xf32>
    %428 = arith.addf %426, %427 : vector<2x128xf32>
    %429 = arith.negf %428 : vector<2x128xf32>
    %430 = math.exp %429 : vector<2x128xf32>
    %cst_69 = arith.constant 1.000000e+00 : f32
    %431 = vector.broadcast %cst_69 : f32 to vector<2x128xf32>
    %432 = arith.addf %431, %430 : vector<2x128xf32>
    %433 = arith.divf %431, %432 : vector<2x128xf32>
    %434 = vector.extract_strided_slice %433 {offsets = [0, 0], sizes = [2, 32], strides = [1, 1]} : vector<2x128xf32> to vector<2x32xf32>
    %435 = vector.extract_strided_slice %433 {offsets = [0, 32], sizes = [2, 32], strides = [1, 1]} : vector<2x128xf32> to vector<2x32xf32>
    %436 = vector.extract_strided_slice %433 {offsets = [0, 96], sizes = [2, 32], strides = [1, 1]} : vector<2x128xf32> to vector<2x32xf32>
    %437 = vector.extract_strided_slice %428 {offsets = [0, 64], sizes = [2, 32], strides = [1, 1]} : vector<2x128xf32> to vector<2x32xf32>
    %438 = math.tanh %437 : vector<2x32xf32>
    %439 = arith.mulf %435, %382 : vector<2x32xf32>
    %440 = arith.mulf %434, %438 : vector<2x32xf32>
    %441 = arith.addf %439, %440 : vector<2x32xf32>
    %442 = math.tanh %441 : vector<2x32xf32>
    %443 = arith.mulf %436, %442 : vector<2x32xf32>
    %444 = tpu.concatenate %403, %423 in 1 : vector<2x32xf32>, vector<2x32xf32> -> vector<2x64xf32>
    %445 = arith.truncf %444 : vector<2x64xf32> to vector<2x64xbf16>
    %cst_70 = arith.constant dense<0.000000e+00> : vector<2x128xf32>
    %446 = tpu.matmul %445, %22, %cst_70 {dimension_numbers = #tpu.dot_dimension_numbers<[1], [0], [0], [1], [0, 0, 1, 1], [], []>} : vector<2x64xbf16>, vector<64x128xbf16>, vector<2x128xf32> -> vector<2x128xf32>
    %447 = vector.broadcast %24 : vector<1x128xf32> to vector<2x128xf32>
    %448 = arith.addf %446, %447 : vector<2x128xf32>
    %449 = arith.negf %448 : vector<2x128xf32>
    %450 = math.exp %449 : vector<2x128xf32>
    %cst_71 = arith.constant 1.000000e+00 : f32
    %451 = vector.broadcast %cst_71 : f32 to vector<2x128xf32>
    %452 = arith.addf %451, %450 : vector<2x128xf32>
    %453 = arith.divf %451, %452 : vector<2x128xf32>
    %454 = vector.extract_strided_slice %453 {offsets = [0, 0], sizes = [2, 32], strides = [1, 1]} : vector<2x128xf32> to vector<2x32xf32>
    %455 = vector.extract_strided_slice %453 {offsets = [0, 32], sizes = [2, 32], strides = [1, 1]} : vector<2x128xf32> to vector<2x32xf32>
    %456 = vector.extract_strided_slice %453 {offsets = [0, 96], sizes = [2, 32], strides = [1, 1]} : vector<2x128xf32> to vector<2x32xf32>
    %457 = vector.extract_strided_slice %448 {offsets = [0, 64], sizes = [2, 32], strides = [1, 1]} : vector<2x128xf32> to vector<2x32xf32>
    %458 = math.tanh %457 : vector<2x32xf32>
    %459 = arith.mulf %455, %421 : vector<2x32xf32>
    %460 = arith.mulf %454, %458 : vector<2x32xf32>
    %461 = arith.addf %459, %460 : vector<2x32xf32>
    %462 = math.tanh %461 : vector<2x32xf32>
    %463 = arith.mulf %456, %462 : vector<2x32xf32>
    %464 = tpu.concatenate %423, %443 in 1 : vector<2x32xf32>, vector<2x32xf32> -> vector<2x64xf32>
    %465 = arith.truncf %464 : vector<2x64xf32> to vector<2x64xbf16>
    %cst_72 = arith.constant dense<0.000000e+00> : vector<2x128xf32>
    %466 = tpu.matmul %465, %23, %cst_72 {dimension_numbers = #tpu.dot_dimension_numbers<[1], [0], [0], [1], [0, 0, 1, 1], [], []>} : vector<2x64xbf16>, vector<64x128xbf16>, vector<2x128xf32> -> vector<2x128xf32>
    %467 = vector.broadcast %25 : vector<1x128xf32> to vector<2x128xf32>
    %468 = arith.addf %466, %467 : vector<2x128xf32>
    %469 = arith.negf %468 : vector<2x128xf32>
    %470 = math.exp %469 : vector<2x128xf32>
    %cst_73 = arith.constant 1.000000e+00 : f32
    %471 = vector.broadcast %cst_73 : f32 to vector<2x128xf32>
    %472 = arith.addf %471, %470 : vector<2x128xf32>
    %473 = arith.divf %471, %472 : vector<2x128xf32>
    %474 = vector.extract_strided_slice %473 {offsets = [0, 0], sizes = [2, 32], strides = [1, 1]} : vector<2x128xf32> to vector<2x32xf32>
    %475 = vector.extract_strided_slice %473 {offsets = [0, 32], sizes = [2, 32], strides = [1, 1]} : vector<2x128xf32> to vector<2x32xf32>
    %476 = vector.extract_strided_slice %473 {offsets = [0, 96], sizes = [2, 32], strides = [1, 1]} : vector<2x128xf32> to vector<2x32xf32>
    %477 = vector.extract_strided_slice %468 {offsets = [0, 64], sizes = [2, 32], strides = [1, 1]} : vector<2x128xf32> to vector<2x32xf32>
    %478 = math.tanh %477 : vector<2x32xf32>
    %479 = arith.mulf %475, %441 : vector<2x32xf32>
    %480 = arith.mulf %474, %478 : vector<2x32xf32>
    %481 = arith.addf %479, %480 : vector<2x32xf32>
    %482 = math.tanh %481 : vector<2x32xf32>
    %483 = arith.mulf %476, %482 : vector<2x32xf32>
    %484 = tpu.concatenate %463, %483 in 1 : vector<2x32xf32>, vector<2x32xf32> -> vector<2x64xf32>
    %485 = arith.truncf %484 : vector<2x64xf32> to vector<2x64xbf16>
    %cst_74 = arith.constant dense<0.000000e+00> : vector<2x128xf32>
    %486 = tpu.matmul %485, %23, %cst_74 {dimension_numbers = #tpu.dot_dimension_numbers<[1], [0], [0], [1], [0, 0, 1, 1], [], []>} : vector<2x64xbf16>, vector<64x128xbf16>, vector<2x128xf32> -> vector<2x128xf32>
    %487 = vector.broadcast %25 : vector<1x128xf32> to vector<2x128xf32>
    %488 = arith.addf %486, %487 : vector<2x128xf32>
    %489 = arith.negf %488 : vector<2x128xf32>
    %490 = math.exp %489 : vector<2x128xf32>
    %cst_75 = arith.constant 1.000000e+00 : f32
    %491 = vector.broadcast %cst_75 : f32 to vector<2x128xf32>
    %492 = arith.addf %491, %490 : vector<2x128xf32>
    %493 = arith.divf %491, %492 : vector<2x128xf32>
    %494 = vector.extract_strided_slice %493 {offsets = [0, 0], sizes = [2, 32], strides = [1, 1]} : vector<2x128xf32> to vector<2x32xf32>
    %495 = vector.extract_strided_slice %493 {offsets = [0, 32], sizes = [2, 32], strides = [1, 1]} : vector<2x128xf32> to vector<2x32xf32>
    %496 = vector.extract_strided_slice %493 {offsets = [0, 96], sizes = [2, 32], strides = [1, 1]} : vector<2x128xf32> to vector<2x32xf32>
    %497 = vector.extract_strided_slice %488 {offsets = [0, 64], sizes = [2, 32], strides = [1, 1]} : vector<2x128xf32> to vector<2x32xf32>
    %498 = math.tanh %497 : vector<2x32xf32>
    %499 = arith.mulf %495, %481 : vector<2x32xf32>
    %500 = arith.mulf %494, %498 : vector<2x32xf32>
    %501 = arith.addf %499, %500 : vector<2x32xf32>
    %502 = math.tanh %501 : vector<2x32xf32>
    %503 = arith.mulf %496, %502 : vector<2x32xf32>
    %504 = tpu.concatenate %148, %207, %266, %325, %384, %443, %483, %503 in 0 : vector<2x32xf32>, vector<2x32xf32>, vector<2x32xf32>, vector<2x32xf32>, vector<2x32xf32>, vector<2x32xf32>, vector<2x32xf32>, vector<2x32xf32> -> vector<16x32xf32>
    %c0_76 = arith.constant 0 : index
    %c0_77 = arith.constant 0 : index
    %505 = vector.load %arg10[%c0_76, %c0_77] : memref<32x1xf32, #tpu.memory_space<vmem>>, vector<32x1xf32>
    %cst_78 = arith.constant dense<0.000000e+00> : vector<16x1xf32>
    %506 = tpu.matmul %504, %505, %cst_78 {dimension_numbers = #tpu.dot_dimension_numbers<[1], [0], [0], [1], [0, 0, 1, 1], [], []>} : vector<16x32xf32>, vector<32x1xf32>, vector<16x1xf32> -> vector<16x1xf32>
    %c0_79 = arith.constant 0 : index
    %c0_80 = arith.constant 0 : index
    %507 = vector.load %arg11[%c0_79, %c0_80] : memref<1x1xf32, #tpu.memory_space<vmem>>, vector<1x1xf32>
    %508 = vector.broadcast %507 : vector<1x1xf32> to vector<16x1xf32>
    %509 = arith.addf %506, %508 : vector<16x1xf32>
    %510 = math.tanh %509 : vector<16x1xf32>
    %511 = vector.extract_strided_slice %510 {offsets = [0, 0], sizes = [2, 1], strides = [1, 1]} : vector<16x1xf32> to vector<2x1xf32>
    %512 = vector.extract_strided_slice %510 {offsets = [2, 0], sizes = [2, 1], strides = [1, 1]} : vector<16x1xf32> to vector<2x1xf32>
    %513 = vector.extract_strided_slice %510 {offsets = [4, 0], sizes = [2, 1], strides = [1, 1]} : vector<16x1xf32> to vector<2x1xf32>
    %514 = vector.extract_strided_slice %510 {offsets = [6, 0], sizes = [2, 1], strides = [1, 1]} : vector<16x1xf32> to vector<2x1xf32>
    %515 = vector.extract_strided_slice %510 {offsets = [8, 0], sizes = [2, 1], strides = [1, 1]} : vector<16x1xf32> to vector<2x1xf32>
    %516 = vector.extract_strided_slice %510 {offsets = [10, 0], sizes = [2, 1], strides = [1, 1]} : vector<16x1xf32> to vector<2x1xf32>
    %517 = vector.extract_strided_slice %510 {offsets = [12, 0], sizes = [2, 1], strides = [1, 1]} : vector<16x1xf32> to vector<2x1xf32>
    %518 = vector.extract_strided_slice %510 {offsets = [14, 0], sizes = [2, 1], strides = [1, 1]} : vector<16x1xf32> to vector<2x1xf32>
    %519 = arith.maximumf %511, %512 : vector<2x1xf32>
    %520 = arith.maximumf %519, %513 : vector<2x1xf32>
    %521 = arith.maximumf %520, %514 : vector<2x1xf32>
    %522 = arith.maximumf %521, %515 : vector<2x1xf32>
    %523 = arith.maximumf %522, %516 : vector<2x1xf32>
    %524 = arith.maximumf %523, %517 : vector<2x1xf32>
    %525 = arith.maximumf %524, %518 : vector<2x1xf32>
    %526 = arith.subf %511, %525 : vector<2x1xf32>
    %527 = math.exp %526 : vector<2x1xf32>
    %528 = arith.subf %512, %525 : vector<2x1xf32>
    %529 = math.exp %528 : vector<2x1xf32>
    %530 = arith.subf %513, %525 : vector<2x1xf32>
    %531 = math.exp %530 : vector<2x1xf32>
    %532 = arith.subf %514, %525 : vector<2x1xf32>
    %533 = math.exp %532 : vector<2x1xf32>
    %534 = arith.subf %515, %525 : vector<2x1xf32>
    %535 = math.exp %534 : vector<2x1xf32>
    %536 = arith.subf %516, %525 : vector<2x1xf32>
    %537 = math.exp %536 : vector<2x1xf32>
    %538 = arith.subf %517, %525 : vector<2x1xf32>
    %539 = math.exp %538 : vector<2x1xf32>
    %540 = arith.subf %518, %525 : vector<2x1xf32>
    %541 = math.exp %540 : vector<2x1xf32>
    %542 = arith.addf %527, %529 : vector<2x1xf32>
    %543 = arith.addf %542, %531 : vector<2x1xf32>
    %544 = arith.addf %543, %533 : vector<2x1xf32>
    %545 = arith.addf %544, %535 : vector<2x1xf32>
    %546 = arith.addf %545, %537 : vector<2x1xf32>
    %547 = arith.addf %546, %539 : vector<2x1xf32>
    %548 = arith.addf %547, %541 : vector<2x1xf32>
    %549 = vector.broadcast %527 : vector<2x1xf32> to vector<2x32xf32>
    %550 = arith.mulf %549, %148 : vector<2x32xf32>
    %551 = vector.broadcast %529 : vector<2x1xf32> to vector<2x32xf32>
    %552 = arith.mulf %551, %207 : vector<2x32xf32>
    %553 = arith.addf %550, %552 : vector<2x32xf32>
    %554 = vector.broadcast %531 : vector<2x1xf32> to vector<2x32xf32>
    %555 = arith.mulf %554, %266 : vector<2x32xf32>
    %556 = arith.addf %553, %555 : vector<2x32xf32>
    %557 = vector.broadcast %533 : vector<2x1xf32> to vector<2x32xf32>
    %558 = arith.mulf %557, %325 : vector<2x32xf32>
    %559 = arith.addf %556, %558 : vector<2x32xf32>
    %560 = vector.broadcast %535 : vector<2x1xf32> to vector<2x32xf32>
    %561 = arith.mulf %560, %384 : vector<2x32xf32>
    %562 = arith.addf %559, %561 : vector<2x32xf32>
    %563 = vector.broadcast %537 : vector<2x1xf32> to vector<2x32xf32>
    %564 = arith.mulf %563, %443 : vector<2x32xf32>
    %565 = arith.addf %562, %564 : vector<2x32xf32>
    %566 = vector.broadcast %539 : vector<2x1xf32> to vector<2x32xf32>
    %567 = arith.mulf %566, %483 : vector<2x32xf32>
    %568 = arith.addf %565, %567 : vector<2x32xf32>
    %569 = vector.broadcast %541 : vector<2x1xf32> to vector<2x32xf32>
    %570 = arith.mulf %569, %503 : vector<2x32xf32>
    %571 = arith.addf %568, %570 : vector<2x32xf32>
    %cst_81 = arith.constant 1.000000e+00 : f32
    %572 = vector.broadcast %cst_81 : f32 to vector<2x1xf32>
    %573 = arith.divf %572, %548 : vector<2x1xf32>
    %574 = vector.broadcast %573 : vector<2x1xf32> to vector<2x32xf32>
    %575 = arith.mulf %571, %574 : vector<2x32xf32>
    %c0_82 = arith.constant 0 : index
    %c0_83 = arith.constant 0 : index
    %576 = vector.load %arg12[%c0_82, %c0_83] : memref<32x3xf32, #tpu.memory_space<vmem>>, vector<32x3xf32>
    %cst_84 = arith.constant dense<0.000000e+00> : vector<2x3xf32>
    %577 = tpu.matmul %575, %576, %cst_84 {dimension_numbers = #tpu.dot_dimension_numbers<[1], [0], [0], [1], [0, 0, 1, 1], [], []>} : vector<2x32xf32>, vector<32x3xf32>, vector<2x3xf32> -> vector<2x3xf32>
    %c0_85 = arith.constant 0 : index
    %c0_86 = arith.constant 0 : index
    %578 = vector.load %arg13[%c0_85, %c0_86] : memref<1x3xf32, #tpu.memory_space<vmem>>, vector<1x3xf32>
    %579 = vector.broadcast %578 : vector<1x3xf32> to vector<2x3xf32>
    %580 = arith.addf %577, %579 : vector<2x3xf32>
    %cst_87 = arith.constant dense<0xFF800000> : vector<2xf32>
    %581 = vector.multi_reduction <maximumf>, %580, %cst_87 [1] : vector<2x3xf32> to vector<2xf32>
    %582 = vector.shape_cast %581 : vector<2xf32> to vector<2x1xf32>
    %583 = vector.broadcast %582 : vector<2x1xf32> to vector<2x3xf32>
    %584 = arith.subf %580, %583 : vector<2x3xf32>
    %585 = math.exp %584 : vector<2x3xf32>
    %cst_88 = arith.constant dense<0.000000e+00> : vector<2xf32>
    %586 = vector.multi_reduction <add>, %585, %cst_88 [1] : vector<2x3xf32> to vector<2xf32>
    %587 = vector.shape_cast %586 : vector<2xf32> to vector<2x1xf32>
    %588 = vector.broadcast %587 : vector<2x1xf32> to vector<2x3xf32>
    %589 = arith.divf %585, %588 : vector<2x3xf32>
    %c0_89 = arith.constant 0 : index
    %c0_90 = arith.constant 0 : index
    %590 = vector.load %arg14[%c0_89, %c0_90] : memref<2x3xf32, #tpu.memory_space<vmem>>, vector<2x3xf32>
    tpu.vector_store %arg14[%c0_89, %c0_90], %589 {strides = array<i32>} : memref<2x3xf32, #tpu.memory_space<vmem>>, vector<2x3xf32>,
    return
  }
}

</mosaic_0001>

<bundles_post_ra>
// kernel: tpu_custom_call.1
= control target key start
LH: loop header
LB: loop body
LE: loop exit
PB: predicated region body
PF: predicated region fallthrough
CT: control target
= control target key end

     0   :  { %s4231_s0 = inlined_call_operand.vmem [shape: f32[16,4], index: 0, kind: input, shape index: {}]   ;;  %s4232_s1 = inlined_call_operand.vmem [shape: bf16[12,16], index: 1, kind: input, shape index: {}]   ;;  %s4233_s2 = inlined_call_operand.hbm [shape: f32[1,16], index: 2, kind: input, shape index: {}]   ;;  %s4234_s3 = inlined_call_operand.vmem [shape: bf16[16,128], index: 3, kind: input, shape index: {}]   ;;  %s4235_s4 = inlined_call_operand.vmem [shape: bf16[32,128], index: 4, kind: input, shape index: {}]   ;;  %s4236_s5 = inlined_call_operand.hbm [shape: f32[1,128], index: 5, kind: input, shape index: {}]   ;;  %s4237_s6 = inlined_call_operand.vmem [shape: bf16[64,128], index: 6, kind: input, shape index: {}]   ;;  %s4238_s7 = inlined_call_operand.vmem [shape: f32[1,128], index: 7, kind: input, shape index: {}]   ;;  %s4239_s8 = inlined_call_operand.vmem [shape: bf16[64,128], index: 8, kind: input, shape index: {}]   ;;  %s4240_s9 = inlined_call_operand.vmem [shape: f32[1,128], index: 9, kind: input, shape index: {}]   ;;  %s4241_s10 = inlined_call_operand.vmem [shape: f32[32,1], index: 10, kind: input, shape index: {}]   ;;  %s4242_s11 = inlined_call_operand.<no memory space> [shape: f32[1,1], index: 11, kind: input, shape index: {}]   ;;  %s4243_s12 = inlined_call_operand.vmem [shape: f32[32,3], index: 12, kind: input, shape index: {}]   ;;  %s4244_s13 = inlined_call_operand.vmem [shape: f32[1,3], index: 13, kind: input, shape index: {}]   ;;  %s4245_s14 = inlined_call_operand.hbm [shape: f32[2,3], index: 14, kind: output, shape index: {}]  }
   0x1   :  { %v19_v0 = vstv %s4242_s11 }
   0x2   :  { %20 = vst [vmem:[#allocation2] sm:$0x1] %v19_v0 }
   0x3   :  { %21 = vsyncpa [#allocation4], 0 }
   0x4   :  { %22 = vsyncpa [#allocation7], 0 }
   0x5   :  { %23 = vsyncpa [#allocation5], 0  ;;  %s3414_s15 = smov [#allocation3]   ;;  %s3415_s17 = smov [#allocation6]  }
   0x6   :  { %s34_s16 = sshll.u32 %s3414_s15, 4  ;;  %s48_s18 = sshll.u32 %s3415_s17, 4  ;;  %s35_s16 = int_to_ptr.vmem [resolvable:$true] %s34_s16  ;;  %s49_s18 = int_to_ptr.vmem [resolvable:$true] %s48_s18 }
   0x7   :  { %s3356_s19 = scalar_lea.vmem %s35_s16, 16  ;;  %s3360_s20 = scalar_lea.vmem %s35_s16, 32 }
   0x8   :  { %p3357_p0 = scmp.ne.s32.totalorder %s35_s16, %s3356_s19  ;;  %p3361_p1 = scmp.lt.s32.totalorder %s35_s16, %s35_s16 }
   0x9   :  { %p3362_p2 = scmp.lt.s32.totalorder %s3360_s20, %s3356_s19 }
   0xb   :  { %p3363_p3 = por %p3362_p2, %p3361_p1 }
   0xd   :  { %p3364_p4 = pnand %p3363_p3, %p3357_p0 }
   0xf   :  { %3367 = shalt.err (!%p3364_p4)
}
  0x10   :  { %37 = dma.hbm_to_vmem [thread:$0]  %s4233_s2, 16, %s35_s16, [#allocation4]  }
  0x11   :  { %s3376_s22 = scalar_lea.vmem %s49_s18, 16  ;;  %s3380_s23 = scalar_lea.vmem %s49_s18, 32 }
  0x12   :  { %p3377_p5 = scmp.ne.s32.totalorder %s49_s18, %s3376_s22  ;;  %p3381_p6 = scmp.lt.s32.totalorder %s49_s18, %s49_s18 }
  0x13   :  { %p3382_p7 = scmp.lt.s32.totalorder %s3380_s23, %s3376_s22 }
  0x15   :  { %p3383_p8 = por %p3382_p7, %p3381_p6 }
  0x17   :  { %p3384_p9 = pnand %p3383_p8, %p3377_p5 }
  0x19   :  { %3387 = shalt.err (!%p3384_p9)
}
  0x1a   :  { %51 = dma.hbm_to_vmem [thread:$0]  %s4236_s5, 16, %s49_s18, [#allocation7]  }
  0x1b   :  { %3408 = dma.done.wait [#allocation4], 16  }
  0x1c   :  { %3409 = vsyncadd [#allocation4], 4294967280 }
  0x1d   :  { %3410 = dma.done.wait [#allocation7], 16  }
  0x1e   :  { %3411 = vsyncadd [#allocation7], 4294967280  ;;  %v3416_v1 = vmov 0.0   ;;  %vm3417_vm0 = vmmov 0   ;;  %vm79_vm1 = vcmask 1041408   ;;  %v75_v2 = vld [vmem:[%s4231_s0] sm:$0xff] }
  0x1f   :  { %2788 = vmatprep.subr.bf16.mxu0 %v3416_v1  ;;  %2794 = vmatprep.subr.bf16.mxu1 %v3416_v1  ;;  %v76_v3 = vld [vmem:[%s4231_s0 + $0x8] sm:$0xff]  ;;  %vm86_vm2 = vcmask 1045504   ;;  %v80_v7 = vrot.slane %v75_v2, 6  ;;  %v87_v8 = vrot.slane %v75_v2, 2  ;;  %v3106_v9 = vld [vmem:[%s4232_s1] sm:$0x3f]  }
  0x20   :  { %2790 = vmatprep.mubr.msk.bf16.mxu0 %vm3417_vm0, %v3416_v1  ;;  %2796 = vmatprep.mubr.msk.bf16.mxu1 %vm3417_vm0, %v3416_v1  ;;  %v81_v4 = vrot.slane %v76_v3, 6  ;;  %v88_v5 = vrot.slane %v76_v3, 2  ;;  %v3089_v6 = vpack.i.bf16 %v76_v3, %v75_v2  ;;  %s3418_s30 = smov 4   ;;  %v131_v13 = vsel %vm86_vm2, %v3106_v9, 0  ;;  %s3419_s0 = smov 8   ;;  %v3535_v27 = vld [vmem:[%s4235_s4 + $0x8] sm:$0xff]  }
  0x21   :  { %2789 = vmatpush3.bf16.msra.mxu0 %v131_v13  ;;  %v85_v18 = vsel %vm79_vm1, 0.0, %v80_v7  ;;  %vm105_vm3 = vcmask 31744   ;;  %vm108_vm4 = vcmask 64512   ;;  %vm126_vm5 = vcmask 97280   ;;  %v3542_v28 = vld [vmem:[%s4235_s4] sm:$0xff]   ;;  %s3422_s20 = smov 32  }
  0x22   :  { %3090 = vrot.lane.b32.xlu0 %v3089_v6, %s3418_s30  ;;  %v91_v10 = vsel %vm86_vm2, %v88_v5, 0.0  ;;  %v82_v11 = vsel %vm79_vm1, %v80_v7, %v81_v4  ;;  %v89_v12 = vsel %vm86_vm2, %v87_v8, %v88_v5  ;;  %2800 = vmatprep.subr.bf16.mxu0 %v3416_v1  ;;  %v3109_v29 = vld [vmem:[%s4234_s3] sm:$0xff]   ;;  %v3420_v30 = vmov 0   ;;  %s3421_s3 = smov 64   ;;  %v3571_v63 = vld [vmem:[%s4237_s6 + $0x18] sm:$0xff]   ;;  %v3577_v0 = vld [vmem:[%s4237_s6 + $0x10] sm:$0xff]  }
  0x23   :  { %v3094_v14 = vpack.i.bf16 %v91_v10, %v89_v12  ;;  %3105 = vset.pattern.permute.xlu1 %v3420_v30  ;;  %2795 = vmatpush3.bf16.msra.mxu1 %v3109_v29  ;;  %v2599_v31 = vld [vmem:[#allocation3] ss:$0 sm:$0xff]  ;;  %vm192_vm6 = vcmask 130048   ;;  %v2602_v45 = vld [vmem:[#allocation6] ss:$0 sm:$0xff]  ;;  %v3584_v2 = vld [vmem:[%s4237_s6 + $0x8] sm:$0xff]  }
  0x24   :  { %2808 = vmatprep.subr.bf16.mxu1 %v3416_v1  ;;  %3104 = vset.pattern.permute.xlu0 %v3420_v30  ;;  %v3593_v4 = vld [vmem:[%s4237_s6] sm:$0xff]   ;;  %vm271_vm7 = vcmask 261120   ;;  %vm454_vm8 = vcmask 523264   ;;  %vm2198_vm9 = vcmask 1043456   ;;  %vm2570_vm10 = vcmask 17408  }
  0x25   :  { %v3613_v12 = vld [vmem:[%s4238_s7] ss:$0 sm:$0xff] }
  0x26   :  { %3095 = vrot.lane.b32.xlu0 %v3094_v14, %s3419_s0 }
  0x94   :  { %v3091_v15 = vpop.permute.xlu0 %3090 }
  0x95   :  { %v3093_v16 = vunpack.i.h.bf16 %v3091_v15  ;;  %v3092_v17 = vunpack.i.l.bf16 %v3091_v15 }
  0x97   :  { %v106_v22 = vsel %vm105_vm3, %v85_v18, %v3092_v17  ;;  %v107_v23 = vsel %vm105_vm3, %v82_v11, %v3093_v16 }
  0x98   :  { %v3096_v19 = vpop.permute.xlu0 %3095 }
  0x99   :  { %v3098_v20 = vunpack.i.h.bf16 %v3096_v19  ;;  %v3097_v21 = vunpack.i.l.bf16 %v3096_v19 }
  0x9b   :  { %v109_v24 = vsel %vm108_vm4, %v106_v22, %v3097_v21  ;;  %v110_v25 = vsel %vm108_vm4, %v107_v23, %v3098_v20 }
  0x9c   :  { %v111_v26 = vpack.c.bf16 %v110_v25, %v109_v24 }
  0x9e   :  { %2791 = vmatmul.mubr.msk.bf16.vlgmr.msra.gmra.mxu0 %vm126_vm5, %v111_v26 }
  0x9f   :  { %2804 = vmatprep.mubr.msk.bf16.mxu0 %vm3417_vm0, %v3416_v1  ;;  %2801 = vmatpush3.bf16.msra.mxu0 %v3535_v27 }
  0xa0   :  { %2802 = vmatprep.subr.bf16.mxu0 %v3416_v1 }
  0xa3   :  { %2803 = vmatpush3.bf16.msra.mxu0 %v3542_v28 }
  0xa4   :  { %2816 = vmatprep.subr.bf16.mxu0 %v3416_v1 }
  0xa6   :  { %2805 = vmatmul.mubr.bf16.vlgmr.msra.gmra.mxu0 %v3420_v30 }
  0xa7   :  { %2824 = vmatprep.mubr.msk.bf16.mxu0 %vm3417_vm0, %v3416_v1  ;;  %2817 = vmatpush3.bf16.msra.mxu0 %v3571_v63 }
  0xa8   :  { %2818 = vmatprep.subr.bf16.mxu0 %v3416_v1 }
  0xab   :  { %2819 = vmatpush3.bf16.msra.mxu0 %v3577_v0 }
  0xac   :  { %2820 = vmatprep.subr.bf16.mxu0 %v3416_v1 }
  0xaf   :  { %2821 = vmatpush3.bf16.msra.mxu0 %v3584_v2 }
  0xb0   :  { %2822 = vmatprep.subr.bf16.mxu0 %v3416_v1 }
  0xb3   :  { %2823 = vmatpush3.bf16.msra.mxu0 %v3593_v4 }
  0xb4   :  { %2848 = vmatprep.subr.bf16.mxu0 %v3416_v1 }
 0x15e   :  { %v167_v32 = vpop.f32.mrf.mxu0 }
 0x15f   :  { %v168_v34 = vadd.f32 %v2599_v31, %v167_v32 }
 0x160   :  { %v2792_v33 = vpop.f32.mrf.mxu0 }
 0x161   :  { %v174_v38 = vmax.f32 %v168_v34, 0.0 }
 0x162   :  { %v170_v35 = vpop.f32.mrf.mxu0 }
 0x163   :  { %v171_v36 = vadd.f32 %v2599_v31, %v170_v35 }
 0x164   :  { %v2793_v37 = vpop.f32.mrf.mxu0 }
 0x165   :  { %v175_v39 = vmax.f32 %v171_v36, 0.0 }
 0x166   :  { %v309_v41 = vpop.f32.mrf.mxu0 }
 0x167   :  { %v176_v40 = vpack.c.bf16 %v175_v39, %v174_v38 }
 0x168   :  { %v2806_v42 = vpop.f32.mrf.mxu0 }
 0x169   :  { %2797 = vmatmul.mubr.msk.bf16.vlgmr.msra.gmra.mxu1 %vm192_vm6, %v176_v40 }
 0x16a   :  { %2809 = vmatpush3.bf16.msra.mxu1 %v3535_v27  ;;  %2812 = vmatprep.mubr.msk.bf16.mxu1 %vm3417_vm0, %v3416_v1  ;;  %v312_v43 = vpop.f32.mrf.mxu0 }
 0x16b   :  { %2810 = vmatprep.subr.bf16.mxu1 %v3416_v1 }
 0x16c   :  { %v2807_v44 = vpop.f32.mrf.mxu0 }
 0x16e   :  { %2811 = vmatpush3.bf16.msra.mxu1 %v3542_v28 }
 0x16f   :  { %2828 = vmatprep.subr.bf16.mxu1 %v3416_v1 }
 0x229   :  { %v230_v46 = vpop.f32.mrf.mxu1 }
 0x22a   :  { %v3558_v47 = vadd.f32 %v2602_v45, %v230_v46 }
 0x22b   :  { %v2798_v48 = vpop.f32.mrf.mxu1 }
 0x22c   :  { %v315_v49 = vadd.f32 %v309_v41, %v3558_v47  ;;  %v3631_v48 = vld [vmem:[%s4239_s8 + $0x18] sm:$0xff]  }
 0x22d   :  { %v233_v50 = vpop.f32.mrf.mxu1 }
 0x22e   :  { %3118 = vtanh.f32 %v315_v49  ;;  %v3561_v51 = vadd.f32 %v2602_v45, %v233_v50  ;;  %v2607_v54 = vmul.f32 -1.442695, %v315_v49 }
 0x22f   :  { %v2799_v52 = vpop.f32.mrf.mxu1 }
 0x230   :  { %3120 = vpow2.f32 %v2607_v54  ;;  %v3638_v52 = vld [vmem:[%s4239_s8 + $0x10] sm:$0xff]   ;;  %v3654_v54 = vld [vmem:[%s4239_s8] sm:$0xff]  }
 0x23b   :  { %v3119_v53 = vpop.eup %3118 }
 0x23c   :  { %325 = vrot.lane.b32.xlu1 %v3119_v53, %s3421_s3  ;;  %v3647_v53 = vld [vmem:[%s4239_s8 + $0x8] sm:$0xff]  }
 0x23d   :  { %v3121_v55 = vpop.eup %3120 }
 0x23e   :  { %v319_v56 = vadd.f32 1.0, %v3121_v55 }
 0x240   :  { %3122 = vrcp.f32 %v319_v56 }
 0x24d   :  { %v3123_v57 = vpop.eup %3122 }
 0x24e   :  { %v323_v60 = vmul.f32 0.0, %v3123_v57 }
 0x2ae   :  { %v326_v58 = vpop.permute.xlu1 %325 }
 0x2af   :  { %v328_v59 = vmul.f32 %v3123_v57, %v326_v58 }
 0x2b1   :  { %330 = vrot.lane.b32.xlu1 %v328_v59, %s3422_s20 }
 0x323   :  { %v331_v61 = vpop.permute.xlu1 %330 }
 0x324   :  { %v3565_v62 = vadd.f32 %v331_v61, %v323_v60 }
 0x326   :  { %3124 = vtanh.f32 %v3565_v62  ;;  %v399_v40 = vrot.slane %v3565_v62, 6 }
 0x333   :  { %v3125_v3 = vpop.eup %3124 }
 0x334   :  { %336 = vrot.lane.b32.xlu0 %v3125_v3, %s3421_s3 }
 0x3a6   :  { %v337_v5 = vpop.permute.xlu0 %336 }
 0x3a7   :  { %v339_v6 = vmul.f32 %v3123_v57, %v337_v5 }
 0x3a9   :  { %v340_v7 = vpack.c.bf16 %v339_v6, %v339_v6  ;;  %419 = vrot.lane.b32.xlu0 %v339_v6, %s3422_s20 }
 0x3ab   :  { %342 = vrot.lane.b32.xlu1 %v340_v7, %s3422_s20 }
 0x41b   :  { %v420_v8 = vpop.permute.xlu0 %419 }
 0x41c   :  { %v422_v9 = vsel %vm271_vm7, %v420_v8, 0.0 }
 0x41d   :  { %v423_v10 = vpack.c.bf16 %v422_v9, %v422_v9  ;;  %v343_v11 = vpop.permute.xlu1 %342 }
 0x41e   :  { %2813 = vmatmul.mubr.msk.bf16.vlgmr.msra.gmra.mxu1 %vm271_vm7, %v343_v11 }
 0x41f   :  { %2825 = vmatmul.mubr.msk.bf16.vlgmr.msra.gmra.mxu0 %vm454_vm8, %v423_v10  ;;  %2829 = vmatpush3.bf16.msra.mxu1 %v3535_v27 }
 0x420   :  { %2830 = vmatprep.subr.bf16.mxu1 %v3416_v1  ;;  %2832 = vmatprep.mubr.msk.bf16.mxu1 %vm3417_vm0, %v3416_v1 }
 0x421   :  { %2856 = vmatprep.mubr.msk.bf16.mxu0 %vm3417_vm0, %v3416_v1  ;;  %2849 = vmatpush3.bf16.msra.mxu0 %v3631_v48 }
 0x422   :  { %2850 = vmatprep.subr.bf16.mxu0 %v3416_v1 }
 0x423   :  { %2831 = vmatpush3.bf16.msra.mxu1 %v3542_v28 }
 0x424   :  { %2836 = vmatprep.subr.bf16.mxu1 %v3416_v1 }
 0x425   :  { %2851 = vmatpush3.bf16.msra.mxu0 %v3638_v52 }
 0x426   :  { %2852 = vmatprep.subr.bf16.mxu0 %v3416_v1 }
 0x429   :  { %2853 = vmatpush3.bf16.msra.mxu0 %v3647_v53 }
 0x42a   :  { %2854 = vmatprep.subr.bf16.mxu0 %v3416_v1 }
 0x42d   :  { %2855 = vmatpush3.bf16.msra.mxu0 %v3654_v54 }
 0x42e   :  { %2868 = vmatprep.subr.bf16.mxu0 %v3416_v1 }
 0x4de   :  { %v381_v13 = vpop.f32.mrf.mxu1 }
 0x4df   :  { %v388_v14 = vrot.slane %v381_v13, 6  ;;  %v492_v15 = vpop.f32.mrf.mxu0 }
 0x4e0   :  { %v493_v16 = vadd.f32 %v3613_v12, %v492_v15  ;;  %v2814_v17 = vpop.f32.mrf.mxu1 }
 0x4e1   :  { %v390_v18 = vadd.f32 %v388_v14, %v3558_v47  ;;  %v2826_v19 = vpop.f32.mrf.mxu0 }
 0x4e2   :  { %3126 = vtanh.f32 %v493_v16  ;;  %v384_v20 = vpop.f32.mrf.mxu1  ;;  %v2616_v26 = vmul.f32 -1.442695, %v493_v16  ;;  %v3696_v16 = vld [vmem:[%s4240_s9] ss:$0 sm:$0xff] }
 0x4e3   :  { %3128 = vtanh.f32 %v390_v18  ;;  %v495_v21 = vpop.f32.mrf.mxu0  ;;  %v2609_v29 = vmul.f32 -1.442695, %v390_v18 }
 0x4e4   :  { %v2815_v22 = vpop.f32.mrf.mxu1  ;;  %3130 = vpow2.f32 %v2616_v26 }
 0x4e5   :  { %v2827_v23 = vpop.f32.mrf.mxu0  ;;  %3132 = vpow2.f32 %v2609_v29 }
 0x4ef   :  { %v3127_v24 = vpop.eup %3126 }
 0x4f0   :  { %v3129_v25 = vpop.eup %3128  ;;  %507 = vrot.lane.b32.xlu0 %v3127_v24, %s3421_s3 }
 0x4f1   :  { %403 = vrot.lane.b32.xlu1 %v3129_v25, %s3421_s3  ;;  %v3131_v30 = vpop.eup %3130 }
 0x4f2   :  { %v3133_v31 = vpop.eup %3132  ;;  %v501_v32 = vadd.f32 1.0, %v3131_v30 }
 0x4f3   :  { %v394_v33 = vadd.f32 1.0, %v3133_v31 }
 0x4f4   :  { %3134 = vrcp.f32 %v501_v32 }
 0x4f5   :  { %3136 = vrcp.f32 %v394_v33 }
 0x501   :  { %v3135_v34 = vpop.eup %3134 }
 0x502   :  { %v3137_v36 = vpop.eup %3136  ;;  %v505_v41 = vmul.f32 0.0, %v3135_v34 }
 0x503   :  { %v401_v43 = vmul.f32 %v3137_v36, %v399_v40 }
 0x562   :  { %v508_v35 = vpop.permute.xlu0 %507 }
 0x563   :  { %v510_v37 = vmul.f32 %v3135_v34, %v508_v35  ;;  %v404_v38 = vpop.permute.xlu1 %403 }
 0x564   :  { %v406_v39 = vmul.f32 %v3137_v36, %v404_v38 }
 0x565   :  { %512 = vrot.lane.b32.xlu0 %v510_v37, %s3422_s20 }
 0x566   :  { %408 = vrot.lane.b32.xlu1 %v406_v39, %s3422_s20 }
 0x5d7   :  { %v513_v42 = vpop.permute.xlu0 %512 }
 0x5d8   :  { %v3622_v44 = vadd.f32 %v513_v42, %v505_v41  ;;  %v409_v45 = vpop.permute.xlu1 %408 }
 0x5d9   :  { %v3624_v46 = vadd.f32 %v409_v45, %v401_v43 }
 0x5da   :  { %3138 = vtanh.f32 %v3622_v44 }
 0x5db   :  { %3140 = vtanh.f32 %v3624_v46 }
 0x5e7   :  { %v3139_v49 = vpop.eup %3138 }
 0x5e8   :  { %v3141_v50 = vpop.eup %3140  ;;  %518 = vrot.lane.b32.xlu0 %v3139_v49, %s3421_s3 }
 0x5e9   :  { %414 = vrot.lane.b32.xlu1 %v3141_v50, %s3421_s3 }
 0x65a   :  { %v519_v57 = vpop.permute.xlu0 %518 }
 0x65b   :  { %v415_v55 = vpop.permute.xlu1 %414  ;;  %v521_v59 = vmul.f32 %v3135_v34, %v519_v57 }
 0x65c   :  { %v417_v56 = vmul.f32 %v3137_v36, %v415_v55 }
 0x65d   :  { %v606_v61 = vrot.slane %v521_v59, 6 }
 0x65e   :  { %v522_v58 = vpack.c.bf16 %v417_v56, %v417_v56  ;;  %602 = vrot.lane.b32.xlu0 %v417_v56, %s3422_s20 }
 0x660   :  { %v524_v60 = vrot.slane %v522_v58, 1 }
 0x662   :  { %525 = vrot.lane.b32.xlu1 %v524_v60, %s3422_s20  ;;  %681 = vrot.lane.b32.xlu0 %v521_v59, %s3422_s20 }
 0x666   :  { %607 = vrot.lane.b32.xlu1 %v606_v61, %s3421_s3  ;;  %v582_v61 = vrot.slane %v3624_v46, 6 }
 0x6d0   :  { %v603_v62 = vpop.permute.xlu0 %602 }
 0x6d4   :  { %v526_v3 = vpop.permute.xlu1 %525  ;;  %v682_v5 = vpop.permute.xlu0 %681 }
 0x6d5   :  { %v684_v6 = vsel %vm271_vm7, %v682_v5, 0.0  ;;  %2833 = vmatmul.mubr.msk.bf16.vlgmr.msra.gmra.mxu1 %vm271_vm7, %v526_v3 }
 0x6d6   :  { %v685_v7 = vpack.c.bf16 %v684_v6, %v684_v6  ;;  %2837 = vmatpush3.bf16.msra.mxu1 %v3571_v63  ;;  %2844 = vmatprep.mubr.msk.bf16.mxu1 %vm3417_vm0, %v3416_v1 }
 0x6d7   :  { %2838 = vmatprep.subr.bf16.mxu1 %v3416_v1 }
 0x6d8   :  { %2857 = vmatmul.mubr.msk.bf16.vlgmr.msra.gmra.mxu0 %vm454_vm8, %v685_v7  ;;  %v608_v8 = vpop.permute.xlu1 %607 }
 0x6d9   :  { %2869 = vmatpush3.bf16.msra.mxu0 %v3571_v63  ;;  %2876 = vmatprep.mubr.msk.bf16.mxu0 %vm3417_vm0, %v3416_v1  ;;  %v610_v9 = vsel %vm271_vm7, %v603_v62, %v608_v8 }
 0x6da   :  { %2839 = vmatpush3.bf16.msra.mxu1 %v3577_v0  ;;  %2870 = vmatprep.subr.bf16.mxu0 %v3416_v1  ;;  %v611_v10 = vpack.c.bf16 %v610_v9, %v610_v9 }
 0x6db   :  { %2840 = vmatprep.subr.bf16.mxu1 %v3416_v1 }
 0x6dc   :  { %v613_v11 = vrot.slane %v611_v10, 1 }
 0x6dd   :  { %2871 = vmatpush3.bf16.msra.mxu0 %v3577_v0 }
 0x6de   :  { %2841 = vmatpush3.bf16.msra.mxu1 %v3584_v2  ;;  %2872 = vmatprep.subr.bf16.mxu0 %v3416_v1 }
 0x6df   :  { %2842 = vmatprep.subr.bf16.mxu1 %v3416_v1 }
 0x6e1   :  { %2873 = vmatpush3.bf16.msra.mxu0 %v3584_v2 }
 0x6e2   :  { %2843 = vmatpush3.bf16.msra.mxu1 %v3593_v4  ;;  %2874 = vmatprep.subr.bf16.mxu0 %v3416_v1 }
 0x6e3   :  { %2860 = vmatprep.subr.bf16.mxu1 %v3416_v1 }
 0x6e5   :  { %2845 = vmatmul.mubr.msk.bf16.vlgmr.msra.gmra.mxu1 %vm454_vm8, %v613_v11  ;;  %2875 = vmatpush3.bf16.msra.mxu0 %v3593_v4 }
 0x6e6   :  { %2861 = vmatpush3.bf16.msra.mxu1 %v3535_v27  ;;  %2864 = vmatprep.mubr.msk.bf16.mxu1 %vm3417_vm0, %v3416_v1 }
 0x6e7   :  { %2862 = vmatprep.subr.bf16.mxu1 %v3416_v1  ;;  %2892 = vmatprep.subr.bf16.mxu0 %v3416_v1 }
 0x6ea   :  { %2863 = vmatpush3.bf16.msra.mxu1 %v3542_v28 }
 0x6eb   :  { %2880 = vmatprep.subr.bf16.mxu1 %v3416_v1 }
 0x795   :  { %v564_v13 = vpop.f32.mrf.mxu1 }
 0x796   :  { %v571_v14 = vrot.slane %v564_v13, 4 }
 0x797   :  { %v2834_v15 = vpop.f32.mrf.mxu1 }
 0x798   :  { %v573_v17 = vadd.f32 %v571_v14, %v3558_v47  ;;  %v753_v18 = vpop.f32.mrf.mxu0 }
 0x799   :  { %v567_v19 = vpop.f32.mrf.mxu1  ;;  %v754_v20 = vadd.f32 %v3696_v16, %v753_v18 }
 0x79a   :  { %3142 = vtanh.f32 %v573_v17  ;;  %v2858_v21 = vpop.f32.mrf.mxu0  ;;  %v2618_v35 = vmul.f32 -1.442695, %v573_v17 }
 0x79b   :  { %v2835_v22 = vpop.f32.mrf.mxu1  ;;  %3144 = vtanh.f32 %v754_v20  ;;  %v2627_v36 = vmul.f32 -1.442695, %v754_v20 }
 0x79c   :  { %v756_v23 = vpop.f32.mrf.mxu0 }
 0x79e   :  { %v2859_v24 = vpop.f32.mrf.mxu0 }
 0x7a5   :  { %v651_v25 = vpop.f32.mrf.mxu1 }
 0x7a6   :  { %v652_v26 = vadd.f32 %v3613_v12, %v651_v25 }
 0x7a7   :  { %v3143_v29 = vpop.eup %3142  ;;  %v2846_v30 = vpop.f32.mrf.mxu1 }
 0x7a8   :  { %3146 = vtanh.f32 %v652_v26  ;;  %586 = vrot.lane.b32.xlu1 %v3143_v29, %s3421_s3  ;;  %v3145_v32 = vpop.eup %3144  ;;  %v2620_v37 = vmul.f32 -1.442695, %v652_v26 }
 0x7a9   :  { %v654_v31 = vpop.f32.mrf.mxu1  ;;  %3148 = vpow2.f32 %v2618_v35 }
 0x7aa   :  { %3150 = vpow2.f32 %v2627_v36 }
 0x7ab   :  { %v2847_v33 = vpop.f32.mrf.mxu1  ;;  %3152 = vpow2.f32 %v2620_v37 }
 0x7ac   :  { %768 = vrot.lane.b32.xlu1 %v3145_v32, %s3421_s3 }
 0x7b5   :  { %v3147_v34 = vpop.eup %3146 }
 0x7b6   :  { %666 = vrot.lane.b32.xlu0 %v3147_v34, %s3421_s3  ;;  %v3149_v38 = vpop.eup %3148 }
 0x7b7   :  { %v577_v39 = vadd.f32 1.0, %v3149_v38  ;;  %v3151_v40 = vpop.eup %3150 }
 0x7b8   :  { %v762_v41 = vadd.f32 1.0, %v3151_v40  ;;  %v3153_v42 = vpop.eup %3152 }
 0x7b9   :  { %3154 = vrcp.f32 %v577_v39  ;;  %v660_v43 = vadd.f32 1.0, %v3153_v42 }
 0x7ba   :  { %3156 = vrcp.f32 %v762_v41 }
 0x7bb   :  { %3158 = vrcp.f32 %v660_v43 }
 0x7c6   :  { %v3155_v45 = vpop.eup %3154 }
 0x7c7   :  { %v3157_v55 = vpop.eup %3156  ;;  %v584_v62 = vmul.f32 %v3155_v45, %v582_v61 }
 0x7c8   :  { %v3159_v58 = vpop.eup %3158  ;;  %v766_v6 = vmul.f32 0.0, %v3157_v55 }
 0x7c9   :  { %v664_v9 = vmul.f32 %v3159_v58, %v3622_v44 }
 0x81a   :  { %v587_v49 = vpop.permute.xlu1 %586 }
 0x81b   :  { %v589_v50 = vmul.f32 %v3155_v45, %v587_v49 }
 0x81d   :  { %591 = vrot.lane.b32.xlu0 %v589_v50, %s3422_s20 }
 0x81e   :  { %v769_v56 = vpop.permute.xlu1 %768 }
 0x81f   :  { %v771_v57 = vmul.f32 %v3157_v55, %v769_v56 }
 0x821   :  { %773 = vrot.lane.b32.xlu0 %v771_v57, %s3422_s20 }
 0x828   :  { %v667_v59 = vpop.permute.xlu0 %666 }
 0x829   :  { %v669_v60 = vmul.f32 %v3159_v58, %v667_v59 }
 0x82b   :  { %671 = vrot.lane.b32.xlu1 %v669_v60, %s3422_s20 }
 0x88f   :  { %v592_v3 = vpop.permute.xlu0 %591 }
 0x890   :  { %v3708_v5 = vadd.f32 %v592_v3, %v584_v62 }
 0x892   :  { %3160 = vtanh.f32 %v3708_v5 }
 0x893   :  { %v774_v7 = vpop.permute.xlu0 %773 }
 0x894   :  { %v3711_v8 = vadd.f32 %v774_v7, %v766_v6 }
 0x896   :  { %3162 = vtanh.f32 %v3711_v8 }
 0x89d   :  { %v672_v10 = vpop.permute.xlu1 %671 }
 0x89e   :  { %v3715_v11 = vadd.f32 %v672_v10, %v664_v9 }
 0x89f   :  { %v3161_v13 = vpop.eup %3160 }
 0x8a0   :  { %3164 = vtanh.f32 %v3715_v11  ;;  %597 = vrot.lane.b32.xlu1 %v3161_v13, %s3421_s3 }
 0x8a3   :  { %v3163_v46 = vpop.eup %3162 }
 0x8a4   :  { %779 = vrot.lane.b32.xlu1 %v3163_v46, %s3421_s3 }
 0x8ad   :  { %v3165_v14 = vpop.eup %3164 }
 0x8ae   :  { %677 = vrot.lane.b32.xlu0 %v3165_v14, %s3421_s3 }
 0x912   :  { %v598_v15 = vpop.permute.xlu1 %597 }
 0x913   :  { %v600_v17 = vmul.f32 %v3155_v45, %v598_v15 }
 0x915   :  { %v783_v18 = vpack.c.bf16 %v600_v17, %v600_v17  ;;  %863 = vrot.lane.b32.xlu1 %v600_v17, %s3422_s20 }
 0x916   :  { %v780_v22 = vpop.permute.xlu1 %779 }
 0x917   :  { %v785_v44 = vrot.slane %v783_v18, 2  ;;  %v3725_v23 = vmul.f32 %v3157_v55, %v780_v22 }
 0x919   :  { %786 = vrot.lane.b32.xlu0 %v785_v44, %s3422_s20 }
 0x920   :  { %v678_v19 = vpop.permute.xlu0 %677 }
 0x921   :  { %v680_v20 = vmul.f32 %v3159_v58, %v678_v19 }
 0x923   :  { %v867_v21 = vrot.slane %v680_v20, 4  ;;  %942 = vrot.lane.b32.xlu1 %v680_v20, %s3422_s20 }
 0x925   :  { %868 = vrot.lane.b32.xlu0 %v867_v21, %s3421_s3 }
 0x929   :  { %946 = vrot.lane.b32.xlu0 %v3725_v23, %s3421_s3 }
 0x987   :  { %v864_v25 = vpop.permute.xlu1 %863 }
 0x98b   :  { %v787_v24 = vpop.permute.xlu0 %786 }
 0x98c   :  { %2865 = vmatmul.mubr.msk.bf16.vlgmr.msra.gmra.mxu1 %vm271_vm7, %v787_v24 }
 0x98d   :  { %2881 = vmatpush3.bf16.msra.mxu1 %v3631_v48  ;;  %2888 = vmatprep.mubr.msk.bf16.mxu1 %vm3417_vm0, %v3416_v1 }
 0x98e   :  { %2882 = vmatprep.subr.bf16.mxu1 %v3416_v1 }
 0x991   :  { %2883 = vmatpush3.bf16.msra.mxu1 %v3638_v52 }
 0x992   :  { %2884 = vmatprep.subr.bf16.mxu1 %v3416_v1 }
 0x995   :  { %2885 = vmatpush3.bf16.msra.mxu1 %v3647_v53  ;;  %v943_v31 = vpop.permute.xlu1 %942 }
 0x996   :  { %2886 = vmatprep.subr.bf16.mxu1 %v3416_v1 }
 0x997   :  { %v869_v26 = vpop.permute.xlu0 %868 }
 0x998   :  { %v871_v29 = vsel %vm271_vm7, %v864_v25, %v869_v26  ;;  %v843_v25 = vrot.slane %v3708_v5, 6 }
 0x999   :  { %v872_v30 = vpack.c.bf16 %v871_v29, %v871_v29  ;;  %2887 = vmatpush3.bf16.msra.mxu1 %v3654_v54 }
 0x99a   :  { %2900 = vmatprep.subr.bf16.mxu1 %v3416_v1 }
 0x99b   :  { %v874_v32 = vrot.slane %v872_v30, 2  ;;  %v947_v33 = vpop.permute.xlu0 %946 }
 0x99c   :  { %v949_v34 = vsel %vm271_vm7, %v943_v31, %v947_v33 }
 0x99d   :  { %v950_v35 = vpack.c.bf16 %v949_v34, %v949_v34  ;;  %2877 = vmatmul.mubr.msk.bf16.vlgmr.msra.gmra.mxu0 %vm454_vm8, %v874_v32 }
 0x99e   :  { %2893 = vmatpush3.bf16.msra.mxu0 %v3535_v27  ;;  %2896 = vmatprep.mubr.msk.bf16.mxu0 %vm3417_vm0, %v3416_v1 }
 0x99f   :  { %2889 = vmatmul.mubr.msk.bf16.vlgmr.msra.gmra.mxu1 %vm454_vm8, %v950_v35  ;;  %2894 = vmatprep.subr.bf16.mxu0 %v3416_v1 }
 0x9a0   :  { %2901 = vmatpush3.bf16.msra.mxu1 %v3571_v63  ;;  %2908 = vmatprep.mubr.msk.bf16.mxu1 %vm3417_vm0, %v3416_v1 }
 0x9a1   :  { %2902 = vmatprep.subr.bf16.mxu1 %v3416_v1 }
 0x9a2   :  { %2895 = vmatpush3.bf16.msra.mxu0 %v3542_v28 }
 0x9a3   :  { %2912 = vmatprep.subr.bf16.mxu0 %v3416_v1 }
 0x9a4   :  { %2903 = vmatpush3.bf16.msra.mxu1 %v3577_v0 }
 0x9a5   :  { %2904 = vmatprep.subr.bf16.mxu1 %v3416_v1 }
 0x9a8   :  { %2905 = vmatpush3.bf16.msra.mxu1 %v3584_v2 }
 0x9a9   :  { %2906 = vmatprep.subr.bf16.mxu1 %v3416_v1 }
 0x9ac   :  { %2907 = vmatpush3.bf16.msra.mxu1 %v3593_v4 }
 0x9ad   :  { %2924 = vmatprep.subr.bf16.mxu1 %v3416_v1 }
 0xa4c   :  { %v825_v36 = vpop.f32.mrf.mxu1 }
 0xa4d   :  { %v832_v37 = vrot.slane %v825_v36, 2 }
 0xa4e   :  { %v2866_v38 = vpop.f32.mrf.mxu1 }
 0xa4f   :  { %v834_v39 = vadd.f32 %v832_v37, %v3558_v47 }
 0xa50   :  { %v828_v40 = vpop.f32.mrf.mxu1 }
 0xa51   :  { %3166 = vtanh.f32 %v834_v39  ;;  %v2629_v62 = vmul.f32 -1.442695, %v834_v39 }
 0xa52   :  { %v2867_v41 = vpop.f32.mrf.mxu1 }
 0xa5d   :  { %v912_v42 = vpop.f32.mrf.mxu0 }
 0xa5e   :  { %v3167_v43 = vpop.eup %3166  ;;  %v913_v45 = vadd.f32 %v3613_v12, %v912_v42 }
 0xa5f   :  { %v2878_v49 = vpop.f32.mrf.mxu0  ;;  %v988_v50 = vpop.f32.mrf.mxu1  ;;  %847 = vrot.lane.b32.xlu1 %v3167_v43, %s3421_s3 }
 0xa60   :  { %3168 = vtanh.f32 %v913_v45  ;;  %v989_v55 = vadd.f32 %v3696_v16, %v988_v50  ;;  %v2631_v3 = vmul.f32 -1.442695, %v913_v45 }
 0xa61   :  { %v915_v56 = vpop.f32.mrf.mxu0  ;;  %v2890_v57 = vpop.f32.mrf.mxu1 }
 0xa62   :  { %3170 = vtanh.f32 %v989_v55  ;;  %v2633_v9 = vmul.f32 -1.442695, %v989_v55 }
 0xa63   :  { %v2879_v58 = vpop.f32.mrf.mxu0  ;;  %v991_v59 = vpop.f32.mrf.mxu1  ;;  %3172 = vpow2.f32 %v2629_v62 }
 0xa64   :  { %3174 = vpow2.f32 %v2631_v3 }
 0xa65   :  { %v2891_v47 = vpop.f32.mrf.mxu1 }
 0xa6d   :  { %v3169_v60 = vpop.eup %3168 }
 0xa6e   :  { %927 = vrot.lane.b32.xlu0 %v3169_v60, %s3421_s3 }
 0xa6f   :  { %v3171_v61 = vpop.eup %3170 }
 0xa70   :  { %1003 = vrot.lane.b32.xlu1 %v3171_v61, %s3421_s3  ;;  %v3173_v6 = vpop.eup %3172 }
 0xa71   :  { %v838_v7 = vadd.f32 1.0, %v3173_v6  ;;  %v3175_v10 = vpop.eup %3174 }
 0xa72   :  { %v921_v13 = vadd.f32 1.0, %v3175_v10 }
 0xa73   :  { %3176 = vrcp.f32 %v838_v7 }
 0xa74   :  { %3178 = vpow2.f32 %v2633_v9 }
 0xa75   :  { %3180 = vrcp.f32 %v921_v13 }
 0xa80   :  { %v3177_v46 = vpop.eup %3176 }
 0xa81   :  { %v3179_v14 = vpop.eup %3178  ;;  %v845_v26 = vmul.f32 %v3177_v46, %v843_v25 }
 0xa82   :  { %v997_v18 = vadd.f32 1.0, %v3179_v14  ;;  %v3181_v44 = vpop.eup %3180 }
 0xa83   :  { %v925_v31 = vmul.f32 %v3181_v44, %v3715_v11 }
 0xa84   :  { %3182 = vrcp.f32 %v997_v18 }
 0xa91   :  { %v3183_v21 = vpop.eup %3182 }
 0xa92   :  { %v1001_v35 = vmul.f32 %v3183_v21, %v3711_v8 }
 0xad1   :  { %v848_v15 = vpop.permute.xlu1 %847 }
 0xad2   :  { %v850_v17 = vmul.f32 %v3177_v46, %v848_v15 }
 0xad4   :  { %852 = vrot.lane.b32.xlu0 %v850_v17, %s3422_s20 }
 0xae0   :  { %v928_v19 = vpop.permute.xlu0 %927 }
 0xae1   :  { %v930_v20 = vmul.f32 %v3181_v44, %v928_v19 }
 0xae2   :  { %v1004_v22 = vpop.permute.xlu1 %1003 }
 0xae3   :  { %932 = vrot.lane.b32.xlu1 %v930_v20, %s3422_s20  ;;  %v1006_v24 = vmul.f32 %v3183_v21, %v1004_v22 }
 0xae5   :  { %1008 = vrot.lane.b32.xlu0 %v1006_v24, %s3422_s20 }
 0xb46   :  { %v853_v29 = vpop.permute.xlu0 %852 }
 0xb47   :  { %v3770_v30 = vadd.f32 %v853_v29, %v845_v26 }
 0xb49   :  { %3184 = vtanh.f32 %v3770_v30 }
 0xb55   :  { %v933_v32 = vpop.permute.xlu1 %932 }
 0xb56   :  { %v3185_v33 = vpop.eup %3184  ;;  %v3774_v34 = vadd.f32 %v933_v32, %v925_v31 }
 0xb57   :  { %858 = vrot.lane.b32.xlu1 %v3185_v33, %s3421_s3  ;;  %v1009_v36 = vpop.permute.xlu0 %1008 }
 0xb58   :  { %3186 = vtanh.f32 %v3774_v34  ;;  %v3779_v5 = vadd.f32 %v1009_v36, %v1001_v35 }
 0xb5a   :  { %3188 = vtanh.f32 %v3779_v5 }
 0xb65   :  { %v3187_v37 = vpop.eup %3186 }
 0xb66   :  { %938 = vrot.lane.b32.xlu0 %v3187_v37, %s3421_s3 }
 0xb67   :  { %v3189_v38 = vpop.eup %3188 }
 0xb68   :  { %1014 = vrot.lane.b32.xlu1 %v3189_v38, %s3421_s3 }
 0xbc9   :  { %v859_v11 = vpop.permute.xlu1 %858 }
 0xbca   :  { %v861_v39 = vmul.f32 %v3177_v46, %v859_v11 }
 0xbcc   :  { %v1018_v40 = vpack.c.bf16 %v861_v39, %v861_v39  ;;  %1095 = vrot.lane.b32.xlu1 %v861_v39, %s3422_s20 }
 0xbce   :  { %v1020_v41 = vrot.slane %v1018_v40, 3 }
 0xbd0   :  { %1021 = vrot.lane.b32.xlu0 %v1020_v41, %s3422_s20 }
 0xbd8   :  { %v939_v8 = vpop.permute.xlu0 %938 }
 0xbd9   :  { %v941_v42 = vmul.f32 %v3181_v44, %v939_v8 }
 0xbda   :  { %v1015_v45 = vpop.permute.xlu1 %1014 }
 0xbdb   :  { %v1099_v43 = vrot.slane %v941_v42, 2  ;;  %1174 = vrot.lane.b32.xlu1 %v941_v42, %s3422_s20  ;;  %v3788_v49 = vmul.f32 %v3183_v21, %v1015_v45  ;;  %v1075_v45 = vrot.slane %v3770_v30, 6 }
 0xbdd   :  { %1100 = vrot.lane.b32.xlu0 %v1099_v43, %s3421_s3 }
 0xbe1   :  { %1178 = vrot.lane.b32.xlu0 %v3788_v49, %s3421_s3 }
 0xc3e   :  { %v1096_v55 = vpop.permute.xlu1 %1095 }
 0xc42   :  { %v1022_v50 = vpop.permute.xlu0 %1021 }
 0xc43   :  { %2897 = vmatmul.mubr.msk.bf16.vlgmr.msra.gmra.mxu0 %vm271_vm7, %v1022_v50 }
 0xc44   :  { %2913 = vmatpush3.bf16.msra.mxu0 %v3631_v48  ;;  %2920 = vmatprep.mubr.msk.bf16.mxu0 %vm3417_vm0, %v3416_v1 }
 0xc45   :  { %2914 = vmatprep.subr.bf16.mxu0 %v3416_v1 }
 0xc48   :  { %2915 = vmatpush3.bf16.msra.mxu0 %v3638_v52 }
 0xc49   :  { %2916 = vmatprep.subr.bf16.mxu0 %v3416_v1 }
 0xc4c   :  { %2917 = vmatpush3.bf16.msra.mxu0 %v3647_v53 }
 0xc4d   :  { %2918 = vmatprep.subr.bf16.mxu0 %v3416_v1  ;;  %v1175_v59 = vpop.permute.xlu1 %1174 }
 0xc4f   :  { %v1101_v56 = vpop.permute.xlu0 %1100 }
 0xc50   :  { %v1103_v57 = vsel %vm271_vm7, %v1096_v55, %v1101_v56  ;;  %2919 = vmatpush3.bf16.msra.mxu0 %v3654_v54 }
 0xc51   :  { %v1104_v58 = vpack.c.bf16 %v1103_v57, %v1103_v57  ;;  %2932 = vmatprep.subr.bf16.mxu0 %v3416_v1 }
 0xc53   :  { %v1106_v47 = vrot.slane %v1104_v58, 3  ;;  %v1179_v60 = vpop.permute.xlu0 %1178 }
 0xc54   :  { %v1181_v61 = vsel %vm271_vm7, %v1175_v59, %v1179_v60 }
 0xc55   :  { %v1182_v62 = vpack.c.bf16 %v1181_v61, %v1181_v61  ;;  %2909 = vmatmul.mubr.msk.bf16.vlgmr.msra.gmra.mxu1 %vm454_vm8, %v1106_v47 }
 0xc56   :  { %2925 = vmatpush3.bf16.msra.mxu1 %v3535_v27  ;;  %2928 = vmatprep.mubr.msk.bf16.mxu1 %vm3417_vm0, %v3416_v1 }
 0xc57   :  { %2921 = vmatmul.mubr.msk.bf16.vlgmr.msra.gmra.mxu0 %vm454_vm8, %v1182_v62  ;;  %2926 = vmatprep.subr.bf16.mxu1 %v3416_v1 }
 0xc58   :  { %2933 = vmatpush3.bf16.msra.mxu0 %v3571_v63  ;;  %2940 = vmatprep.mubr.msk.bf16.mxu0 %vm3417_vm0, %v3416_v1 }
 0xc59   :  { %2934 = vmatprep.subr.bf16.mxu0 %v3416_v1 }
 0xc5a   :  { %2927 = vmatpush3.bf16.msra.mxu1 %v3542_v28 }
 0xc5b   :  { %2944 = vmatprep.subr.bf16.mxu1 %v3416_v1 }
 0xc5c   :  { %2935 = vmatpush3.bf16.msra.mxu0 %v3577_v0 }
 0xc5d   :  { %2936 = vmatprep.subr.bf16.mxu0 %v3416_v1 }
 0xc60   :  { %2937 = vmatpush3.bf16.msra.mxu0 %v3584_v2 }
 0xc61   :  { %2938 = vmatprep.subr.bf16.mxu0 %v3416_v1 }
 0xc64   :  { %2939 = vmatpush3.bf16.msra.mxu0 %v3593_v4 }
 0xc65   :  { %2956 = vmatprep.subr.bf16.mxu0 %v3416_v1 }
 0xd03   :  { %v1060_v27 = vpop.f32.mrf.mxu0 }
 0xd04   :  { %v1066_v3 = vadd.f32 %v1060_v27, %v3561_v51 }
 0xd05   :  { %v2898_v6 = vpop.f32.mrf.mxu0 }
 0xd06   :  { %3190 = vtanh.f32 %v1066_v3  ;;  %v2635_v24 = vmul.f32 -1.442695, %v1066_v3 }
 0xd07   :  { %v1063_v28 = vpop.f32.mrf.mxu0 }
 0xd09   :  { %v2899_v7 = vpop.f32.mrf.mxu0 }
 0xd13   :  { %v3191_v9 = vpop.eup %3190 }
 0xd14   :  { %1079 = vrot.lane.b32.xlu1 %v3191_v9, %s3421_s3 }
 0xd15   :  { %v1144_v10 = vpop.f32.mrf.mxu1 }
 0xd16   :  { %v1145_v13 = vadd.f32 %v3613_v12, %v1144_v10 }
 0xd17   :  { %v2910_v46 = vpop.f32.mrf.mxu1  ;;  %v1220_v14 = vpop.f32.mrf.mxu0 }
 0xd18   :  { %v1221_v15 = vadd.f32 %v3696_v16, %v1220_v14  ;;  %3192 = vtanh.f32 %v1145_v13  ;;  %v2637_v26 = vmul.f32 -1.442695, %v1145_v13 }
 0xd19   :  { %v1147_v17 = vpop.f32.mrf.mxu1  ;;  %v2922_v18 = vpop.f32.mrf.mxu0 }
 0xd1a   :  { %3194 = vtanh.f32 %v1221_v15  ;;  %v2639_v31 = vmul.f32 -1.442695, %v1221_v15 }
 0xd1b   :  { %v2911_v44 = vpop.f32.mrf.mxu1  ;;  %v1223_v19 = vpop.f32.mrf.mxu0  ;;  %3196 = vpow2.f32 %v2635_v24 }
 0xd1c   :  { %3198 = vpow2.f32 %v2637_v26  ;;  %v3872_v19 = vld [vmem:[%s4235_s4 + $0x8] sm:$0xff]  }
 0xd1d   :  { %v2923_v20 = vpop.f32.mrf.mxu0 }
 0xd25   :  { %v3193_v21 = vpop.eup %3192 }
 0xd26   :  { %1159 = vrot.lane.b32.xlu0 %v3193_v21, %s3421_s3  ;;  %v3882_v21 = vld [vmem:[%s4235_s4] sm:$0xff]  }
 0xd27   :  { %v3195_v22 = vpop.eup %3194 }
 0xd28   :  { %1235 = vrot.lane.b32.xlu1 %v3195_v22, %s3421_s3  ;;  %v3197_v25 = vpop.eup %3196 }
 0xd29   :  { %v1070_v29 = vadd.f32 1.0, %v3197_v25  ;;  %v3199_v32 = vpop.eup %3198 }
 0xd2a   :  { %v1153_v38 = vadd.f32 1.0, %v3199_v32 }
 0xd2b   :  { %3200 = vrcp.f32 %v1070_v29 }
 0xd2c   :  { %3202 = vpow2.f32 %v2639_v31 }
 0xd2d   :  { %3204 = vrcp.f32 %v1153_v38 }
 0xd38   :  { %v3201_v33 = vpop.eup %3200 }
 0xd39   :  { %v3203_v36 = vpop.eup %3202  ;;  %v1077_v50 = vmul.f32 %v3201_v33, %v1075_v45 }
 0xd3a   :  { %v1229_v11 = vadd.f32 1.0, %v3203_v36  ;;  %v3205_v39 = vpop.eup %3204 }
 0xd3b   :  { %v1157_v58 = vmul.f32 %v3205_v39, %v3774_v34 }
 0xd3c   :  { %3206 = vrcp.f32 %v1229_v11 }
 0xd49   :  { %v3207_v8 = vpop.eup %3206 }
 0xd4a   :  { %v1233_v60 = vmul.f32 %v3207_v8, %v3779_v5 }
 0xd86   :  { %v1080_v35 = vpop.permute.xlu1 %1079 }
 0xd87   :  { %v1082_v37 = vmul.f32 %v3201_v33, %v1080_v35 }
 0xd89   :  { %1084 = vrot.lane.b32.xlu0 %v1082_v37, %s3422_s20 }
 0xd98   :  { %v1160_v40 = vpop.permute.xlu0 %1159 }
 0xd99   :  { %v1162_v41 = vmul.f32 %v3205_v39, %v1160_v40 }
 0xd9a   :  { %v1236_v42 = vpop.permute.xlu1 %1235 }
 0xd9b   :  { %v1238_v43 = vmul.f32 %v3207_v8, %v1236_v42  ;;  %1164 = vrot.lane.b32.xlu1 %v1162_v41, %s3422_s20 }
 0xd9d   :  { %1240 = vrot.lane.b32.xlu0 %v1238_v43, %s3422_s20 }
 0xdfb   :  { %v1085_v55 = vpop.permute.xlu0 %1084 }
 0xdfc   :  { %v3833_v56 = vadd.f32 %v1085_v55, %v1077_v50 }
 0xdfe   :  { %3208 = vtanh.f32 %v3833_v56 }
 0xe0b   :  { %v3209_v57 = vpop.eup %3208 }
 0xe0c   :  { %1090 = vrot.lane.b32.xlu1 %v3209_v57, %s3421_s3 }
 0xe0d   :  { %v1165_v59 = vpop.permute.xlu1 %1164 }
 0xe0e   :  { %v3838_v47 = vadd.f32 %v1165_v59, %v1157_v58 }
 0xe0f   :  { %v1241_v61 = vpop.permute.xlu0 %1240 }
 0xe10   :  { %3210 = vtanh.f32 %v3838_v47  ;;  %v3842_v30 = vadd.f32 %v1241_v61, %v1233_v60 }
 0xe12   :  { %3212 = vtanh.f32 %v3842_v30 }
 0xe1d   :  { %v3211_v62 = vpop.eup %3210 }
 0xe1e   :  { %1170 = vrot.lane.b32.xlu0 %v3211_v62, %s3421_s3 }
 0xe1f   :  { %v3213_v27 = vpop.eup %3212 }
 0xe20   :  { %1246 = vrot.lane.b32.xlu1 %v3213_v27, %s3421_s3 }
 0xe7e   :  { %v1091_v3 = vpop.permute.xlu1 %1090 }
 0xe7f   :  { %v1093_v34 = vmul.f32 %v3201_v33, %v1091_v3 }
 0xe81   :  { %v1250_v6 = vpack.c.bf16 %v1093_v34, %v1093_v34  ;;  %1329 = vrot.lane.b32.xlu1 %v1093_v34, %s3422_s20 }
 0xe83   :  { %1252 = vrot.lane.b32.xlu0 %v1250_v6, %s3422_s20 }
 0xe90   :  { %v1171_v5 = vpop.permute.xlu0 %1170 }
 0xe91   :  { %v1173_v28 = vmul.f32 %v3205_v39, %v1171_v5  ;;  %v1309_v5 = vrot.slane %v3833_v56, 6 }
 0xe92   :  { %v1247_v7 = vpop.permute.xlu1 %1246 }
 0xe93   :  { %1333 = vrot.lane.b32.xlu0 %v1173_v28, %s3421_s3  ;;  %1405 = vrot.lane.b32.xlu1 %v1173_v28, %s3422_s20  ;;  %v3851_v9 = vmul.f32 %v3207_v8, %v1247_v7 }
 0xe97   :  { %1409 = vrot.lane.b32.xlu0 %v3851_v9, %s3421_s3 }
 0xef3   :  { %v1330_v13 = vpop.permute.xlu1 %1329 }
 0xef5   :  { %v1253_v10 = vpop.permute.xlu0 %1252 }
 0xef6   :  { %2929 = vmatmul.mubr.msk.bf16.vlgmr.msra.gmra.mxu1 %vm271_vm7, %v1253_v10 }
 0xef7   :  { %2945 = vmatpush3.bf16.msra.mxu1 %v3631_v48  ;;  %2952 = vmatprep.mubr.msk.bf16.mxu1 %vm3417_vm0, %v3416_v1 }
 0xef8   :  { %2946 = vmatprep.subr.bf16.mxu1 %v3416_v1 }
 0xefb   :  { %2947 = vmatpush3.bf16.msra.mxu1 %v3638_v52 }
 0xefc   :  { %2948 = vmatprep.subr.bf16.mxu1 %v3416_v1 }
 0xeff   :  { %2949 = vmatpush3.bf16.msra.mxu1 %v3647_v53 }
 0xf00   :  { %2950 = vmatprep.subr.bf16.mxu1 %v3416_v1 }
 0xf03   :  { %2951 = vmatpush3.bf16.msra.mxu1 %v3654_v54 }
 0xf04   :  { %2964 = vmatprep.subr.bf16.mxu1 %v3416_v1 }
 0xf05   :  { %v1334_v46 = vpop.permute.xlu0 %1333  ;;  %v1406_v17 = vpop.permute.xlu1 %1405 }
 0xf06   :  { %v1336_v14 = vsel %vm271_vm7, %v1330_v13, %v1334_v46 }
 0xf07   :  { %v1337_v15 = vpack.c.bf16 %v1336_v14, %v1336_v14 }
 0xf09   :  { %v1410_v18 = vpop.permute.xlu0 %1409  ;;  %2941 = vmatmul.mubr.msk.bf16.vlgmr.msra.gmra.mxu0 %vm454_vm8, %v1337_v15 }
 0xf0a   :  { %v1412_v44 = vsel %vm271_vm7, %v1406_v17, %v1410_v18  ;;  %2957 = vmatpush3.bf16.msra.mxu0 %v3872_v19  ;;  %2960 = vmatprep.mubr.msk.bf16.mxu0 %vm3417_vm0, %v3416_v1 }
 0xf0b   :  { %v1413_v20 = vpack.c.bf16 %v1412_v44, %v1412_v44  ;;  %2958 = vmatprep.subr.bf16.mxu0 %v3416_v1 }
 0xf0d   :  { %2953 = vmatmul.mubr.msk.bf16.vlgmr.msra.gmra.mxu1 %vm454_vm8, %v1413_v20 }
 0xf0e   :  { %2959 = vmatpush3.bf16.msra.mxu0 %v3882_v21  ;;  %2965 = vmatpush3.bf16.msra.mxu1 %v3571_v63 }
 0xf0f   :  { %2976 = vmatprep.subr.bf16.mxu0 %v3416_v1  ;;  %2966 = vmatprep.subr.bf16.mxu1 %v3416_v1 }
 0xf10   :  { %2972 = vmatprep.mubr.msk.bf16.mxu1 %vm3417_vm0, %v3416_v1 }
 0xf12   :  { %2967 = vmatpush3.bf16.msra.mxu1 %v3577_v0 }
 0xf13   :  { %2968 = vmatprep.subr.bf16.mxu1 %v3416_v1 }
 0xf16   :  { %2969 = vmatpush3.bf16.msra.mxu1 %v3584_v2 }
 0xf17   :  { %2970 = vmatprep.subr.bf16.mxu1 %v3416_v1 }
 0xf1a   :  { %2971 = vmatpush3.bf16.msra.mxu1 %v3593_v4 }
 0xf1b   :  { %2988 = vmatprep.subr.bf16.mxu1 %v3416_v1 }
 0xfb6   :  { %v1291_v63 = vpop.f32.mrf.mxu1 }
 0xfb7   :  { %v1298_v22 = vrot.slane %v1291_v63, 6 }
 0xfb8   :  { %v2930_v24 = vpop.f32.mrf.mxu1 }
 0xfb9   :  { %v1300_v25 = vadd.f32 %v1298_v22, %v3561_v51 }
 0xfba   :  { %v1294_v26 = vpop.f32.mrf.mxu1 }
 0xfbb   :  { %3214 = vtanh.f32 %v1300_v25  ;;  %v2641_v41 = vmul.f32 -1.442695, %v1300_v25 }
 0xfbc   :  { %v2931_v29 = vpop.f32.mrf.mxu1 }
 0xfc8   :  { %v3215_v31 = vpop.eup %3214 }
 0xfc9   :  { %1313 = vrot.lane.b32.xlu1 %v3215_v31, %s3421_s3  ;;  %v1375_v0 = vpop.f32.mrf.mxu0 }
 0xfca   :  { %v1376_v2 = vadd.f32 %v3613_v12, %v1375_v0 }
 0xfcb   :  { %v2942_v32 = vpop.f32.mrf.mxu0 }
 0xfcc   :  { %3216 = vtanh.f32 %v1376_v2  ;;  %v2643_v8 = vmul.f32 -1.442695, %v1376_v2 }
 0xfcd   :  { %v1378_v33 = vpop.f32.mrf.mxu0  ;;  %v1451_v4 = vpop.f32.mrf.mxu1 }
 0xfce   :  { %v1452_v35 = vadd.f32 %v3696_v16, %v1451_v4 }
 0xfcf   :  { %v2943_v36 = vpop.f32.mrf.mxu0  ;;  %v2954_v37 = vpop.f32.mrf.mxu1 }
 0xfd0   :  { %3218 = vtanh.f32 %v1452_v35  ;;  %v2645_v43 = vmul.f32 -1.442695, %v1452_v35 }
 0xfd1   :  { %v1454_v38 = vpop.f32.mrf.mxu1  ;;  %3220 = vpow2.f32 %v2641_v41 }
 0xfd2   :  { %3222 = vpow2.f32 %v2643_v8 }
 0xfd3   :  { %v2955_v11 = vpop.f32.mrf.mxu1 }
 0xfd9   :  { %v3217_v39 = vpop.eup %3216 }
 0xfda   :  { %1390 = vrot.lane.b32.xlu0 %v3217_v39, %s3421_s3 }
 0xfdd   :  { %v3219_v40 = vpop.eup %3218 }
 0xfde   :  { %1466 = vrot.lane.b32.xlu1 %v3219_v40, %s3421_s3  ;;  %v3221_v12 = vpop.eup %3220 }
 0xfdf   :  { %v1304_v42 = vadd.f32 1.0, %v3221_v12  ;;  %v3223_v45 = vpop.eup %3222 }
 0xfe0   :  { %v1384_v59 = vadd.f32 1.0, %v3223_v45 }
 0xfe1   :  { %3224 = vrcp.f32 %v1304_v42 }
 0xfe2   :  { %3226 = vpow2.f32 %v2645_v43  ;;  %v3984_v43 = vld [vmem:[%s4238_s7] ss:$0 sm:$0xff] }
 0xfe3   :  { %3228 = vrcp.f32 %v1384_v59 }
 0xfee   :  { %v3225_v50 = vpop.eup %3224 }
 0xfef   :  { %v3227_v58 = vpop.eup %3226  ;;  %v1311_v28 = vmul.f32 %v3225_v50, %v1309_v5 }
 0xff0   :  { %v1460_v60 = vadd.f32 1.0, %v3227_v58  ;;  %v3229_v61 = vpop.eup %3228 }
 0xff1   :  { %v1388_v46 = vmul.f32 %v3229_v61, %v3838_v47 }
 0xff2   :  { %3230 = vrcp.f32 %v1460_v60 }
 0xfff   :  { %v3231_v3 = vpop.eup %3230 }
0x1000   :  { %v1464_v17 = vmul.f32 %v3231_v3, %v3842_v30 }
0x103b   :  { %v1314_v55 = vpop.permute.xlu1 %1313 }
0x103c   :  { %v1316_v57 = vmul.f32 %v3225_v50, %v1314_v55 }
0x103e   :  { %1318 = vrot.lane.b32.xlu0 %v1316_v57, %s3422_s20 }
0x104c   :  { %v1391_v62 = vpop.permute.xlu0 %1390 }
0x104d   :  { %v1393_v27 = vmul.f32 %v3229_v61, %v1391_v62 }
0x104f   :  { %1395 = vrot.lane.b32.xlu1 %v1393_v27, %s3422_s20 }
0x1050   :  { %v1467_v34 = vpop.permute.xlu1 %1466 }
0x1051   :  { %v1469_v6 = vmul.f32 %v3231_v3, %v1467_v34 }
0x1053   :  { %1471 = vrot.lane.b32.xlu0 %v1469_v6, %s3422_s20 }
0x10b0   :  { %v1319_v7 = vpop.permute.xlu0 %1318 }
0x10b1   :  { %v3906_v10 = vadd.f32 %v1319_v7, %v1311_v28 }
0x10b3   :  { %3232 = vtanh.f32 %v3906_v10 }
0x10c0   :  { %v3233_v13 = vpop.eup %3232 }
0x10c1   :  { %1324 = vrot.lane.b32.xlu1 %v3233_v13, %s3421_s3  ;;  %v1396_v14 = vpop.permute.xlu1 %1395 }
0x10c2   :  { %v3911_v15 = vadd.f32 %v1396_v14, %v1388_v46 }
0x10c4   :  { %3234 = vtanh.f32 %v3911_v15 }
0x10c5   :  { %v1472_v18 = vpop.permute.xlu0 %1471 }
0x10c6   :  { %v3915_v56 = vadd.f32 %v1472_v18, %v1464_v17 }
0x10c8   :  { %3236 = vtanh.f32 %v3915_v56 }
0x10d1   :  { %v3235_v44 = vpop.eup %3234 }
0x10d2   :  { %1401 = vrot.lane.b32.xlu0 %v3235_v44, %s3421_s3 }
0x10d5   :  { %v3237_v20 = vpop.eup %3236 }
0x10d6   :  { %1477 = vrot.lane.b32.xlu1 %v3237_v20, %s3421_s3 }
0x1133   :  { %v1325_v63 = vpop.permute.xlu1 %1324 }
0x1134   :  { %v1327_v47 = vmul.f32 %v3225_v50, %v1325_v63 }
0x1136   :  { %v1481_v22 = vpack.c.bf16 %v1327_v47, %v1327_v47  ;;  %1561 = vrot.lane.b32.xlu1 %v1327_v47, %s3422_s20 }
0x1138   :  { %v1483_v24 = vrot.slane %v1481_v22, 1 }
0x113a   :  { %1484 = vrot.lane.b32.xlu0 %v1483_v24, %s3422_s20 }
0x1144   :  { %v1402_v30 = vpop.permute.xlu0 %1401 }
0x1145   :  { %v1404_v25 = vmul.f32 %v3229_v61, %v1402_v30 }
0x1147   :  { %v1565_v26 = vrot.slane %v1404_v25, 6  ;;  %1640 = vrot.lane.b32.xlu1 %v1404_v25, %s3422_s20  ;;  %v1541_v25 = vrot.slane %v3906_v10, 6 }
0x1148   :  { %v1478_v29 = vpop.permute.xlu1 %1477 }
0x1149   :  { %1566 = vrot.lane.b32.xlu0 %v1565_v26, %s3421_s3  ;;  %v3924_v31 = vmul.f32 %v3231_v3, %v1478_v29 }
0x114d   :  { %1644 = vrot.lane.b32.xlu0 %v3924_v31, %s3421_s3 }
0x11a8   :  { %v1562_v2 = vpop.permute.xlu1 %1561 }
0x11ac   :  { %v1485_v0 = vpop.permute.xlu0 %1484 }
0x11ad   :  { %2961 = vmatmul.mubr.msk.bf16.vlgmr.msra.gmra.mxu0 %vm271_vm7, %v1485_v0 }
0x11ae   :  { %2977 = vmatpush3.bf16.msra.mxu0 %v3631_v48  ;;  %2984 = vmatprep.mubr.msk.bf16.mxu0 %vm3417_vm0, %v3416_v1 }
0x11af   :  { %2978 = vmatprep.subr.bf16.mxu0 %v3416_v1 }
0x11b2   :  { %2979 = vmatpush3.bf16.msra.mxu0 %v3638_v52 }
0x11b3   :  { %2980 = vmatprep.subr.bf16.mxu0 %v3416_v1 }
0x11b6   :  { %2981 = vmatpush3.bf16.msra.mxu0 %v3647_v53  ;;  %v3950_v53 = vld [vmem:[%s4237_s6 + $0x18] sm:$0xff]  }
0x11b7   :  { %2982 = vmatprep.subr.bf16.mxu0 %v3416_v1 }
0x11b9   :  { %v1641_v4 = vpop.permute.xlu1 %1640 }
0x11ba   :  { %2983 = vmatpush3.bf16.msra.mxu0 %v3654_v54  ;;  %v3961_v54 = vld [vmem:[%s4237_s6 + $0x10] sm:$0xff]  }
0x11bb   :  { %2996 = vmatprep.subr.bf16.mxu0 %v3416_v1  ;;  %v1567_v32 = vpop.permute.xlu0 %1566 }
0x11bc   :  { %v1569_v48 = vsel %vm271_vm7, %v1562_v2, %v1567_v32 }
0x11bd   :  { %v1570_v33 = vpack.c.bf16 %v1569_v48, %v1569_v48 }
0x11bf   :  { %v1572_v35 = vrot.slane %v1570_v33, 1  ;;  %v1645_v36 = vpop.permute.xlu0 %1644 }
0x11c0   :  { %v1647_v52 = vsel %vm271_vm7, %v1641_v4, %v1645_v36 }
0x11c1   :  { %v1648_v37 = vpack.c.bf16 %v1647_v52, %v1647_v52  ;;  %2973 = vmatmul.mubr.msk.bf16.vlgmr.msra.gmra.mxu1 %vm454_vm8, %v1572_v35 }
0x11c2   :  { %2989 = vmatpush3.bf16.msra.mxu1 %v3872_v19  ;;  %2992 = vmatprep.mubr.msk.bf16.mxu1 %vm3417_vm0, %v3416_v1  ;;  %v3968_v19 = vld [vmem:[%s4237_s6 + $0x8] sm:$0xff]  }
0x11c3   :  { %2985 = vmatmul.mubr.msk.bf16.vlgmr.msra.gmra.mxu0 %vm454_vm8, %v1648_v37  ;;  %2990 = vmatprep.subr.bf16.mxu1 %v3416_v1 }
0x11c4   :  { %2997 = vmatpush3.bf16.msra.mxu0 %v3950_v53  ;;  %3004 = vmatprep.mubr.msk.bf16.mxu0 %vm3417_vm0, %v3416_v1 }
0x11c5   :  { %2998 = vmatprep.subr.bf16.mxu0 %v3416_v1 }
0x11c6   :  { %2991 = vmatpush3.bf16.msra.mxu1 %v3882_v21  ;;  %v3975_v21 = vld [vmem:[%s4237_s6] sm:$0xff]  }
0x11c7   :  { %3008 = vmatprep.subr.bf16.mxu1 %v3416_v1 }
0x11c8   :  { %2999 = vmatpush3.bf16.msra.mxu0 %v3961_v54 }
0x11c9   :  { %3000 = vmatprep.subr.bf16.mxu0 %v3416_v1 }
0x11cc   :  { %3001 = vmatpush3.bf16.msra.mxu0 %v3968_v19 }
0x11cd   :  { %3002 = vmatprep.subr.bf16.mxu0 %v3416_v1 }
0x11d0   :  { %3003 = vmatpush3.bf16.msra.mxu0 %v3975_v21 }
0x11d1   :  { %3020 = vmatprep.subr.bf16.mxu0 %v3416_v1 }
0x126d   :  { %v1523_v38 = vpop.f32.mrf.mxu0 }
0x126e   :  { %v1530_v11 = vrot.slane %v1523_v38, 4 }
0x126f   :  { %v2962_v39 = vpop.f32.mrf.mxu0 }
0x1270   :  { %v1532_v40 = vadd.f32 %v1530_v11, %v3561_v51 }
0x1271   :  { %v1526_v41 = vpop.f32.mrf.mxu0 }
0x1272   :  { %3238 = vtanh.f32 %v1532_v40  ;;  %v2647_v34 = vmul.f32 -1.442695, %v1532_v40 }
0x1273   :  { %v2963_v12 = vpop.f32.mrf.mxu0 }
0x127f   :  { %v3239_v8 = vpop.eup %3238 }
0x1280   :  { %1545 = vrot.lane.b32.xlu1 %v3239_v8, %s3421_s3 }
0x1281   :  { %v1610_v42 = vpop.f32.mrf.mxu1 }
0x1282   :  { %v1611_v45 = vadd.f32 %v3984_v43, %v1610_v42  ;;  %v4020_v42 = vld [vmem:[%s4239_s8 + $0x18] sm:$0xff]  }
0x1283   :  { %v2974_v50 = vpop.f32.mrf.mxu1  ;;  %v1686_v55 = vpop.f32.mrf.mxu0 }
0x1284   :  { %3240 = vtanh.f32 %v1611_v45  ;;  %v1687_v57 = vadd.f32 %v3696_v16, %v1686_v55  ;;  %v2649_v28 = vmul.f32 -1.442695, %v1611_v45  ;;  %v4029_v45 = vld [vmem:[%s4239_s8 + $0x10] sm:$0xff]   ;;  %v4036_v50 = vld [vmem:[%s4239_s8 + $0x8] sm:$0xff]   ;;  %v4043_v55 = vld [vmem:[%s4239_s8] sm:$0xff]  }
0x1285   :  { %v1613_v58 = vpop.f32.mrf.mxu1  ;;  %v2986_v59 = vpop.f32.mrf.mxu0 }
0x1286   :  { %3242 = vtanh.f32 %v1687_v57  ;;  %v2651_v7 = vmul.f32 -1.442695, %v1687_v57 }
0x1287   :  { %v2975_v60 = vpop.f32.mrf.mxu1  ;;  %v1689_v61 = vpop.f32.mrf.mxu0  ;;  %3244 = vpow2.f32 %v2647_v34 }
0x1289   :  { %v2987_v62 = vpop.f32.mrf.mxu0 }
0x1291   :  { %v3241_v27 = vpop.eup %3240 }
0x1292   :  { %1625 = vrot.lane.b32.xlu0 %v3241_v27, %s3421_s3 }
0x1293   :  { %v3243_v3 = vpop.eup %3242 }
0x1294   :  { %1701 = vrot.lane.b32.xlu1 %v3243_v3, %s3421_s3  ;;  %v3245_v6 = vpop.eup %3244 }
0x1295   :  { %v1536_v5 = vadd.f32 1.0, %v3245_v6 }
0x1297   :  { %3246 = vrcp.f32 %v1536_v5 }
0x1298   :  { %3248 = vpow2.f32 %v2649_v28 }
0x1299   :  { %3250 = vpow2.f32 %v2651_v7 }
0x12a4   :  { %v3247_v16 = vpop.eup %3246 }
0x12a5   :  { %v3249_v13 = vpop.eup %3248  ;;  %v1543_v26 = vmul.f32 %v3247_v16, %v1541_v25 }
0x12a6   :  { %v3251_v17 = vpop.eup %3250  ;;  %v1619_v18 = vadd.f32 1.0, %v3249_v13 }
0x12a7   :  { %v1695_v44 = vadd.f32 1.0, %v3251_v17 }
0x12a8   :  { %3252 = vrcp.f32 %v1619_v18 }
0x12a9   :  { %3254 = vrcp.f32 %v1695_v44 }
0x12b5   :  { %v3253_v20 = vpop.eup %3252 }
0x12b6   :  { %v3255_v22 = vpop.eup %3254  ;;  %v1623_v32 = vmul.f32 %v3253_v20, %v3911_v15 }
0x12b7   :  { %v1699_v4 = vmul.f32 %v3255_v22, %v3915_v56 }
0x12f2   :  { %v1546_v46 = vpop.permute.xlu1 %1545 }
0x12f3   :  { %v1548_v14 = vmul.f32 %v3247_v16, %v1546_v46 }
0x12f5   :  { %1550 = vrot.lane.b32.xlu0 %v1548_v14, %s3422_s20  ;;  %v4076_v14 = vld [vmem:[%s4240_s9] ss:$0 sm:$0xff] }
0x1304   :  { %v1626_v63 = vpop.permute.xlu0 %1625 }
0x1305   :  { %v1628_v47 = vmul.f32 %v3253_v20, %v1626_v63 }
0x1306   :  { %v1702_v24 = vpop.permute.xlu1 %1701 }
0x1307   :  { %1630 = vrot.lane.b32.xlu1 %v1628_v47, %s3422_s20  ;;  %v1704_v30 = vmul.f32 %v3255_v22, %v1702_v24 }
0x1309   :  { %1706 = vrot.lane.b32.xlu0 %v1704_v30, %s3422_s20 }
0x1367   :  { %v1551_v29 = vpop.permute.xlu0 %1550 }
0x1368   :  { %v3994_v0 = vadd.f32 %v1551_v29, %v1543_v26 }
0x136a   :  { %3256 = vtanh.f32 %v3994_v0 }
0x1377   :  { %v3257_v2 = vpop.eup %3256 }
0x1378   :  { %1556 = vrot.lane.b32.xlu1 %v3257_v2, %s3421_s3 }
0x1379   :  { %v1631_v48 = vpop.permute.xlu1 %1630 }
0x137a   :  { %v3999_v33 = vadd.f32 %v1631_v48, %v1623_v32 }
0x137b   :  { %v1707_v35 = vpop.permute.xlu0 %1706 }
0x137c   :  { %3258 = vtanh.f32 %v3999_v33  ;;  %v4003_v10 = vadd.f32 %v1707_v35, %v1699_v4 }
0x137e   :  { %3260 = vtanh.f32 %v4003_v10 }
0x1389   :  { %v3259_v36 = vpop.eup %3258 }
0x138a   :  { %1636 = vrot.lane.b32.xlu0 %v3259_v36, %s3421_s3 }
0x138b   :  { %v3261_v52 = vpop.eup %3260 }
0x138c   :  { %1712 = vrot.lane.b32.xlu1 %v3261_v52, %s3421_s3 }
0x13ea   :  { %v1557_v37 = vpop.permute.xlu1 %1556 }
0x13eb   :  { %v1559_v15 = vmul.f32 %v3247_v16, %v1557_v37 }
0x13ed   :  { %v1716_v38 = vpack.c.bf16 %v1559_v15, %v1559_v15  ;;  %1796 = vrot.lane.b32.xlu1 %v1559_v15, %s3422_s20 }
0x13ef   :  { %v1718_v11 = vrot.slane %v1716_v38, 2 }
0x13f1   :  { %1719 = vrot.lane.b32.xlu0 %v1718_v11, %s3422_s20 }
0x13fc   :  { %v1637_v56 = vpop.permute.xlu0 %1636 }
0x13fd   :  { %v1639_v39 = vmul.f32 %v3253_v20, %v1637_v56 }
0x13fe   :  { %v1713_v41 = vpop.permute.xlu1 %1712 }
0x13ff   :  { %v1800_v40 = vrot.slane %v1639_v39, 4  ;;  %1875 = vrot.lane.b32.xlu1 %v1639_v39, %s3422_s20  ;;  %v4012_v12 = vmul.f32 %v3255_v22, %v1713_v41 }
0x1401   :  { %1801 = vrot.lane.b32.xlu0 %v1800_v40, %s3421_s3  ;;  %v1776_v40 = vrot.slane %v3994_v0, 6 }
0x1405   :  { %1879 = vrot.lane.b32.xlu0 %v4012_v12, %s3421_s3 }
0x145f   :  { %v1797_v57 = vpop.permute.xlu1 %1796 }
0x1463   :  { %v1720_v8 = vpop.permute.xlu0 %1719 }
0x1464   :  { %2993 = vmatmul.mubr.msk.bf16.vlgmr.msra.gmra.mxu1 %vm271_vm7, %v1720_v8 }
0x1465   :  { %3009 = vmatpush3.bf16.msra.mxu1 %v4020_v42  ;;  %3016 = vmatprep.mubr.msk.bf16.mxu1 %vm3417_vm0, %v3416_v1 }
0x1466   :  { %3010 = vmatprep.subr.bf16.mxu1 %v3416_v1 }
0x1469   :  { %3011 = vmatpush3.bf16.msra.mxu1 %v4029_v45 }
0x146a   :  { %3012 = vmatprep.subr.bf16.mxu1 %v3416_v1 }
0x146d   :  { %3013 = vmatpush3.bf16.msra.mxu1 %v4036_v50 }
0x146e   :  { %3014 = vmatprep.subr.bf16.mxu1 %v3416_v1 }
0x1471   :  { %3015 = vmatpush3.bf16.msra.mxu1 %v4043_v55  ;;  %v1876_v61 = vpop.permute.xlu1 %1875 }
0x1472   :  { %3032 = vmatprep.subr.bf16.mxu1 %v3416_v1 }
0x1473   :  { %v1802_v58 = vpop.permute.xlu0 %1801 }
0x1474   :  { %v1804_v59 = vsel %vm271_vm7, %v1797_v57, %v1802_v58 }
0x1475   :  { %v1805_v60 = vpack.c.bf16 %v1804_v59, %v1804_v59 }
0x1477   :  { %v1807_v62 = vrot.slane %v1805_v60, 2  ;;  %v1880_v27 = vpop.permute.xlu0 %1879 }
0x1478   :  { %v1882_v3 = vsel %vm271_vm7, %v1876_v61, %v1880_v27 }
0x1479   :  { %v1883_v34 = vpack.c.bf16 %v1882_v3, %v1882_v3  ;;  %3005 = vmatmul.mubr.msk.bf16.vlgmr.msra.gmra.mxu0 %vm454_vm8, %v1807_v62 }
0x147a   :  { %3021 = vmatpush3.bf16.msra.mxu0 %v3950_v53  ;;  %3028 = vmatprep.mubr.msk.bf16.mxu0 %vm3417_vm0, %v3416_v1 }
0x147b   :  { %3017 = vmatmul.mubr.msk.bf16.vlgmr.msra.gmra.mxu1 %vm454_vm8, %v1883_v34  ;;  %3022 = vmatprep.subr.bf16.mxu0 %v3416_v1 }
0x147c   :  { %3033 = vmatpush3.bf16.msra.mxu1 %v4020_v42  ;;  %3040 = vmatprep.mubr.msk.bf16.mxu1 %vm3417_vm0, %v3416_v1 }
0x147d   :  { %3034 = vmatprep.subr.bf16.mxu1 %v3416_v1 }
0x147e   :  { %3023 = vmatpush3.bf16.msra.mxu0 %v3961_v54 }
0x147f   :  { %3024 = vmatprep.subr.bf16.mxu0 %v3416_v1 }
0x1480   :  { %3035 = vmatpush3.bf16.msra.mxu1 %v4029_v45 }
0x1481   :  { %3036 = vmatprep.subr.bf16.mxu1 %v3416_v1 }
0x1482   :  { %3025 = vmatpush3.bf16.msra.mxu0 %v3968_v19 }
0x1483   :  { %3026 = vmatprep.subr.bf16.mxu0 %v3416_v1 }
0x1484   :  { %3037 = vmatpush3.bf16.msra.mxu1 %v4036_v50 }
0x1485   :  { %3038 = vmatprep.subr.bf16.mxu1 %v3416_v1 }
0x1486   :  { %3027 = vmatpush3.bf16.msra.mxu0 %v3975_v21 }
0x1487   :  { %3044 = vmatprep.subr.bf16.mxu0 %v3416_v1 }
0x1488   :  { %3039 = vmatpush3.bf16.msra.mxu1 %v4043_v55 }
0x1524   :  { %v1758_v53 = vpop.f32.mrf.mxu1 }
0x1525   :  { %v1765_v54 = vrot.slane %v1758_v53, 2 }
0x1526   :  { %v2994_v6 = vpop.f32.mrf.mxu1 }
0x1527   :  { %v1767_v5 = vadd.f32 %v1765_v54, %v3561_v51 }
0x1528   :  { %v1761_v28 = vpop.f32.mrf.mxu1 }
0x1529   :  { %3262 = vtanh.f32 %v1767_v5  ;;  %v2653_v24 = vmul.f32 -1.442695, %v1767_v5 }
0x152a   :  { %v2995_v19 = vpop.f32.mrf.mxu1 }
0x1536   :  { %v3263_v7 = vpop.eup %3262 }
0x1537   :  { %1780 = vrot.lane.b32.xlu0 %v3263_v7, %s3421_s3 }
0x1539   :  { %v1845_v16 = vpop.f32.mrf.mxu0 }
0x153a   :  { %v1846_v13 = vadd.f32 %v3984_v43, %v1845_v16 }
0x153b   :  { %v3006_v46 = vpop.f32.mrf.mxu0  ;;  %v1921_v21 = vpop.f32.mrf.mxu1 }
0x153c   :  { %3264 = vtanh.f32 %v1846_v13  ;;  %v1922_v17 = vadd.f32 %v4076_v14, %v1921_v21  ;;  %v2655_v26 = vmul.f32 -1.442695, %v1846_v13 }
0x153d   :  { %v1848_v51 = vpop.f32.mrf.mxu0  ;;  %v3018_v18 = vpop.f32.mrf.mxu1 }
0x153e   :  { %3266 = vtanh.f32 %v1922_v17  ;;  %v2657_v29 = vmul.f32 -1.442695, %v1922_v17 }
0x153f   :  { %v3007_v44 = vpop.f32.mrf.mxu0  ;;  %v1924_v20 = vpop.f32.mrf.mxu1  ;;  %3268 = vpow2.f32 %v2653_v24 }
0x1541   :  { %v3019_v63 = vpop.f32.mrf.mxu1 }
0x1549   :  { %v3265_v47 = vpop.eup %3264 }
0x154a   :  { %1860 = vrot.lane.b32.xlu1 %v3265_v47, %s3421_s3 }
0x154b   :  { %v3267_v22 = vpop.eup %3266 }
0x154c   :  { %v3269_v30 = vpop.eup %3268 }
0x154d   :  { %v1771_v25 = vadd.f32 1.0, %v3269_v30 }
0x154e   :  { %1936 = vrot.lane.b32.xlu1 %v3267_v22, %s3421_s3 }
0x154f   :  { %3270 = vrcp.f32 %v1771_v25 }
0x1550   :  { %3272 = vpow2.f32 %v2655_v26 }
0x1551   :  { %3274 = vpow2.f32 %v2657_v29 }
0x155c   :  { %v3271_v2 = vpop.eup %3270 }
0x155d   :  { %v3273_v48 = vpop.eup %3272  ;;  %v1778_v41 = vmul.f32 %v3271_v2, %v1776_v40 }
0x155e   :  { %v1854_v35 = vadd.f32 1.0, %v3273_v48  ;;  %v3275_v36 = vpop.eup %3274 }
0x155f   :  { %v1930_v52 = vadd.f32 1.0, %v3275_v36 }
0x1560   :  { %3276 = vrcp.f32 %v1854_v35 }
0x1561   :  { %3278 = vrcp.f32 %v1930_v52 }
0x156d   :  { %v3277_v37 = vpop.eup %3276 }
0x156e   :  { %v3279_v11 = vpop.eup %3278  ;;  %v1858_v59 = vmul.f32 %v3277_v37, %v3999_v33 }
0x156f   :  { %v1934_v62 = vmul.f32 %v3279_v11, %v4003_v10 }
0x15a9   :  { %v1781_v32 = vpop.permute.xlu0 %1780 }
0x15aa   :  { %v1783_v4 = vmul.f32 %v3271_v2, %v1781_v32 }
0x15ac   :  { %1785 = vrot.lane.b32.xlu1 %v1783_v4, %s3422_s20 }
0x15bc   :  { %v1861_v15 = vpop.permute.xlu1 %1860 }
0x15bd   :  { %v1863_v38 = vmul.f32 %v3277_v37, %v1861_v15 }
0x15bf   :  { %1865 = vrot.lane.b32.xlu0 %v1863_v38, %s3422_s20 }
0x15c0   :  { %v1937_v56 = vpop.permute.xlu1 %1936 }
0x15c1   :  { %v1939_v39 = vmul.f32 %v3279_v11, %v1937_v56 }
0x15c3   :  { %1941 = vrot.lane.b32.xlu0 %v1939_v39, %s3422_s20 }
0x161e   :  { %v1786_v8 = vpop.permute.xlu1 %1785 }
0x161f   :  { %v1788_v57 = vadd.f32 %v1786_v8, %v1778_v41 }
0x1621   :  { %3280 = vtanh.f32 %v1788_v57 }
0x162e   :  { %v3281_v58 = vpop.eup %3280 }
0x162f   :  { %1791 = vrot.lane.b32.xlu0 %v3281_v58, %s3421_s3 }
0x1631   :  { %v1866_v60 = vpop.permute.xlu0 %1865 }
0x1632   :  { %v4087_v61 = vadd.f32 %v1866_v60, %v1858_v59 }
0x1634   :  { %3282 = vtanh.f32 %v4087_v61 }
0x1635   :  { %v1942_v27 = vpop.permute.xlu0 %1941 }
0x1636   :  { %v4091_v3 = vadd.f32 %v1942_v27, %v1934_v62 }
0x1638   :  { %3284 = vtanh.f32 %v4091_v3 }
0x1641   :  { %v3283_v0 = vpop.eup %3282 }
0x1642   :  { %1871 = vrot.lane.b32.xlu1 %v3283_v0, %s3421_s3 }
0x1645   :  { %v3285_v34 = vpop.eup %3284 }
0x1646   :  { %1947 = vrot.lane.b32.xlu1 %v3285_v34, %s3421_s3 }
0x16a1   :  { %v1792_v53 = vpop.permute.xlu0 %1791 }
0x16a2   :  { %v1794_v54 = vmul.f32 %v3271_v2, %v1792_v53 }
0x16b4   :  { %v1872_v33 = vpop.permute.xlu1 %1871 }
0x16b5   :  { %v1874_v6 = vmul.f32 %v3277_v37, %v1872_v33 }
0x16b7   :  { %v3099_v5 = vpack.i.bf16 %v1874_v6, %v1794_v54  ;;  %v1956_v28 = vrot.slane %v1874_v6, 2 }
0x16b8   :  { %v1948_v19 = vpop.permute.xlu1 %1947 }
0x16b9   :  { %3100 = vrot.lane.b32.xlu0 %v3099_v5, %s3422_s20  ;;  %1957 = vrot.lane.b32.xlu1 %v1956_v28, %s3421_s3  ;;  %v4098_v10 = vmul.f32 %v3279_v11, %v1948_v19 }
0x16bd   :  { %2035 = vrot.lane.b32.xlu0 %v4098_v10, %s3421_s3 }
0x172b   :  { %v3101_v7 = vpop.permute.xlu0 %3100  ;;  %v1958_v13 = vpop.permute.xlu1 %1957 }
0x172c   :  { %v3102_v16 = vunpack.i.l.bf16 %v3101_v7  ;;  %v3103_v46 = vunpack.i.h.bf16 %v3101_v7 }
0x172e   :  { %v1960_v21 = vsel %vm271_vm7, %v3102_v16, %v1958_v13 }
0x172f   :  { %v1961_v17 = vpack.c.bf16 %v1960_v21, %v1960_v21  ;;  %v2036_v51 = vpop.permute.xlu0 %2035  ;;  %v2184_v21 = vrot.slane %v3788_v49, 6 }
0x1730   :  { %v2038_v18 = vsel %vm271_vm7, %v3103_v46, %v2036_v51  ;;  %v2186_v51 = vrot.slane %v3851_v9, 4 }
0x1731   :  { %v1963_v44 = vrot.slane %v1961_v17, 3  ;;  %v2039_v20 = vpack.c.bf16 %v2038_v18, %v2038_v18 }
0x1733   :  { %3029 = vmatmul.mubr.msk.bf16.vlgmr.msra.gmra.mxu0 %vm454_vm8, %v1963_v44  ;;  %3041 = vmatmul.mubr.msk.bf16.vlgmr.msra.gmra.mxu1 %vm454_vm8, %v2039_v20  ;;  %v2197_v44 = vsel %vm79_vm1, %v3725_v23, %v2184_v21 }
0x1734   :  { %3045 = vmatpush3.bf16.msra.mxu0 %v4020_v42  ;;  %3052 = vmatprep.mubr.msk.bf16.mxu0 %vm3417_vm0, %v3416_v1  ;;  %v2199_v20 = vsel %vm2198_vm9, %v2197_v44, %v2186_v51 }
0x1735   :  { %3046 = vmatprep.subr.bf16.mxu0 %v3416_v1 }
0x1738   :  { %3047 = vmatpush3.bf16.msra.mxu0 %v4029_v45 }
0x1739   :  { %3048 = vmatprep.subr.bf16.mxu0 %v3416_v1 }
0x173c   :  { %3049 = vmatpush3.bf16.msra.mxu0 %v4036_v50 }
0x173d   :  { %3050 = vmatprep.subr.bf16.mxu0 %v3416_v1 }
0x1740   :  { %3051 = vmatpush3.bf16.msra.mxu0 %v4043_v55 }
0x17f3   :  { %v2001_v63 = vpop.f32.mrf.mxu0  ;;  %v2077_v47 = vpop.f32.mrf.mxu1 }
0x17f4   :  { %v2002_v22 = vadd.f32 %v3984_v43, %v2001_v63  ;;  %v2078_v42 = vadd.f32 %v4076_v14, %v2077_v47 }
0x17f5   :  { %v3030_v24 = vpop.f32.mrf.mxu0  ;;  %v3042_v30 = vpop.f32.mrf.mxu1 }
0x17f6   :  { %3286 = vtanh.f32 %v2002_v22  ;;  %v2659_v55 = vmul.f32 -1.442695, %v2002_v22  ;;  %v2661_v32 = vmul.f32 -1.442695, %v2078_v42  ;;  %v2207_v24 = vld [vmem:[%s4241_s10 + $0x18] sm:$0xff]  ;;  %v2206_v30 = vld [vmem:[%s4241_s10 + $0x10] sm:$0xff] }
0x17f7   :  { %3288 = vtanh.f32 %v2078_v42  ;;  %v2004_v25 = vpop.f32.mrf.mxu0  ;;  %v2080_v45 = vpop.f32.mrf.mxu1  ;;  %3056 = vmatprep.subr.mxu1 %v2207_v24 }
0x17f8   :  { %3290 = vpow2.f32 %v2659_v55  ;;  %3057 = vmatpush3.msra.mxu1 %v2207_v24  ;;  %v2205_v25 = vld [vmem:[%s4241_s10 + $0x8] sm:$0xff] }
0x17f9   :  { %v3031_v26 = vpop.f32.mrf.mxu0  ;;  %v3043_v29 = vpop.f32.mrf.mxu1  ;;  %3292 = vpow2.f32 %v2661_v32  ;;  %3058 = vmatprep.subr.mxu1 %v2206_v30 }
0x17fa   :  { %3059 = vmatpush3.msra.mxu1 %v2206_v30  ;;  %v2204_v26 = vld [vmem:[%s4241_s10] sm:$0xff]  ;;  %v2190_v29 = vrot.slane %v4098_v10, 6  ;;  %s3423_s10 = smov 96  }
0x17fb   :  { %3060 = vmatprep.subr.mxu1 %v2205_v25 }
0x17fc   :  { %3061 = vmatpush3.msra.mxu1 %v2205_v25  ;;  %v2201_v32 = vsel %vm79_vm1, %v4012_v12, %v2190_v29 }
0x17fd   :  { %3062 = vmatprep.subr.mxu1 %v2204_v26 }
0x17fe   :  { %3063 = vmatpush3.msra.mxu1 %v2204_v26 }
0x17ff   :  { %3067 = vmatprep.subr.mxu1 %v3416_v1 }
0x1803   :  { %v3287_v2 = vpop.eup %3286 }
0x1804   :  { %v3289_v50 = vpop.eup %3288  ;;  %2016 = vrot.lane.b32.xlu1 %v3287_v2, %s3421_s3 }
0x1805   :  { %2092 = vrot.lane.b32.xlu0 %v3289_v50, %s3421_s3  ;;  %v3291_v43 = vpop.eup %3290 }
0x1806   :  { %v3293_v48 = vpop.eup %3292  ;;  %v2010_v4 = vadd.f32 1.0, %v3291_v43 }
0x1807   :  { %v2086_v35 = vadd.f32 1.0, %v3293_v48 }
0x1808   :  { %3294 = vrcp.f32 %v2010_v4 }
0x1809   :  { %3296 = vrcp.f32 %v2086_v35 }
0x1815   :  { %v3295_v36 = vpop.eup %3294 }
0x1816   :  { %v3297_v37 = vpop.eup %3296  ;;  %v2014_v56 = vmul.f32 %v3295_v36, %v4087_v61 }
0x1817   :  { %v2090_v39 = vmul.f32 %v3297_v37, %v4091_v3 }
0x1876   :  { %v2017_v52 = vpop.permute.xlu1 %2016 }
0x1877   :  { %v2093_v15 = vpop.permute.xlu0 %2092  ;;  %v2019_v38 = vmul.f32 %v3295_v36, %v2017_v52  ;;  %v2664_v52 = vld [vmem:[#allocation2] ss:$0 sm:$0xff] }
0x1878   :  { %v2095_v11 = vmul.f32 %v3297_v37, %v2093_v15 }
0x1879   :  { %2021 = vrot.lane.b32.xlu1 %v2019_v38, %s3422_s20 }
0x187a   :  { %2097 = vrot.lane.b32.xlu0 %v2095_v11, %s3422_s20 }
0x18eb   :  { %v2022_v40 = vpop.permute.xlu1 %2021 }
0x18ec   :  { %v2098_v41 = vpop.permute.xlu0 %2097  ;;  %v2024_v8 = vadd.f32 %v2022_v40, %v2014_v56 }
0x18ed   :  { %v2100_v57 = vadd.f32 %v2098_v41, %v2090_v39 }
0x18ee   :  { %3298 = vtanh.f32 %v2024_v8 }
0x18ef   :  { %3300 = vtanh.f32 %v2100_v57 }
0x18fb   :  { %v3299_v58 = vpop.eup %3298 }
0x18fc   :  { %v3301_v59 = vpop.eup %3300  ;;  %2027 = vrot.lane.b32.xlu1 %v3299_v58, %s3421_s3 }
0x18fd   :  { %2103 = vrot.lane.b32.xlu0 %v3301_v59, %s3421_s3 }
0x196e   :  { %v2028_v60 = vpop.permute.xlu1 %2027 }
0x196f   :  { %v2104_v62 = vpop.permute.xlu0 %2103  ;;  %v2030_v27 = vmul.f32 %v3295_v36, %v2028_v60 }
0x1970   :  { %v4125_v0 = vmul.f32 %v3297_v37, %v2104_v62 }
0x1971   :  { %2108 = vrot.lane.b32.xlu1 %v2030_v27, %s3422_s20 }
0x1972   :  { %2112 = vrot.lane.b32.xlu0 %v4125_v0, %s3421_s3  ;;  %v2192_v2 = vrot.slane %v4125_v0, 4 }
0x1974   :  { %v2202_v48 = vsel %vm2198_vm9, %v2201_v32, %v2192_v2 }
0x19e3   :  { %v2109_v61 = vpop.permute.xlu1 %2108 }
0x19e4   :  { %v2113_v3 = vpop.permute.xlu0 %2112 }
0x19e5   :  { %v2115_v34 = vsel %vm271_vm7, %v2109_v61, %v2113_v3 }
0x19e6   :  { %v2116_v53 = vpack.c.bf16 %v2115_v34, %v2115_v34 }
0x19e8   :  { %3053 = vmatmul.mubr.msk.bf16.vlgmr.msra.gmra.mxu0 %vm454_vm8, %v2116_v53 }
0x1aa8   :  { %v2154_v33 = vpop.f32.mrf.mxu0 }
0x1aa9   :  { %v2155_v54 = vadd.f32 %v4076_v14, %v2154_v33  ;;  %v2188_v14 = vrot.slane %v3924_v31, 2 }
0x1aaa   :  { %v3054_v6 = vpop.f32.mrf.mxu0 }
0x1aab   :  { %3302 = vtanh.f32 %v2155_v54  ;;  %v2663_v7 = vmul.f32 -1.442695, %v2155_v54  ;;  %v2200_v63 = vsel %vm86_vm2, %v2199_v20, %v2188_v14 }
0x1aac   :  { %v2157_v5 = vpop.f32.mrf.mxu0 }
0x1aad   :  { %3304 = vpow2.f32 %v2663_v7 }
0x1aae   :  { %v3055_v28 = vpop.f32.mrf.mxu0 }
0x1ab8   :  { %v3303_v19 = vpop.eup %3302 }
0x1ab9   :  { %2169 = vrot.lane.b32.xlu1 %v3303_v19, %s3421_s3 }
0x1aba   :  { %v3305_v16 = vpop.eup %3304 }
0x1abb   :  { %v2163_v13 = vadd.f32 1.0, %v3305_v16 }
0x1abd   :  { %3306 = vrcp.f32 %v2163_v13 }
0x1aca   :  { %v3307_v46 = vpop.eup %3306 }
0x1acb   :  { %v2167_v9 = vmul.f32 %v3307_v46, %v2100_v57 }
0x1b2b   :  { %v2170_v17 = vpop.permute.xlu1 %2169 }
0x1b2c   :  { %v2172_v18 = vmul.f32 %v3307_v46, %v2170_v17 }
0x1b2e   :  { %2174 = vrot.lane.b32.xlu0 %v2172_v18, %s3422_s20 }
0x1b32   :  { %2217 = vrot.lane.b32.xlu0 %v2200_v63, %s3422_s20 }
0x1ba0   :  { %v2175_v47 = vpop.permute.xlu0 %2174 }
0x1ba1   :  { %v2177_v22 = vadd.f32 %v2175_v47, %v2167_v9 }
0x1ba3   :  { %3308 = vtanh.f32 %v2177_v22 }
0x1ba4   :  { %v2218_v42 = vpop.permute.xlu0 %2217 }
0x1ba5   :  { %3064 = vmatprep.mubr.msk.f32.mxu1 %vm271_vm7, %v2218_v42 }
0x1bb0   :  { %v3309_v45 = vpop.eup %3308 }
0x1bb1   :  { %2180 = vrot.lane.b32.xlu1 %v3309_v45, %s3421_s3 }
0x1c23   :  { %v2181_v50 = vpop.permute.xlu1 %2180 }
0x1c24   :  { %v4164_v55 = vmul.f32 %v3307_v46, %v2181_v50 }
0x1c26   :  { %v2195_v43 = vrot.slane %v4164_v55, 2 }
0x1c28   :  { %v2203_v4 = vsel %vm86_vm2, %v2202_v48, %v2195_v43 }
0x1c29   :  { %2219 = vrot.lane.b32.xlu1 %v2203_v4, %s3422_s20 }
0x1c2d   :  { %2403 = vrot.lane.b32.xlu1 %v2186_v51, %s3422_s20 }
0x1c9b   :  { %v2220_v35 = vpop.permute.xlu1 %2219 }
0x1c9c   :  { %3065 = vmatmul.mubr.msk.f32.vlgmr.msra.gmra.mxu1 %vm271_vm7, %v2220_v35 }
0x1c9d   :  { %3075 = vmatprep.mubr.msk.f32.mxu1 %vm3417_vm0, %v3416_v1 }
0x1c9f   :  { %v2404_v31 = vpop.permute.xlu1 %2403 }
0x1d5c   :  { %v3066_v36 = vpop.f32.mrf.mxu1 }
0x1d5d   :  { %v2297_v38 = vadd.f32 %v3066_v36, %v2664_v52 }
0x1d5e   :  { %v2291_v37 = vpop.f32.mrf.mxu1 }
0x1d5f   :  { %v2292_v15 = vadd.f32 %v2664_v52, %v2291_v37 }
0x1d61   :  { %3310 = vtanh.f32 %v2292_v15 }
0x1d62   :  { %3312 = vtanh.f32 %v2297_v38 }
0x1d6e   :  { %v3311_v11 = vpop.eup %3310 }
0x1d6f   :  { %v2303_v56 = vrot.slane %v3311_v11, 2  ;;  %v2306_v40 = vrot.slane %v3311_v11, 4  ;;  %v2309_v8 = vrot.slane %v3311_v11, 6  ;;  %v3313_v57 = vpop.eup %3312 }
0x1d70   :  { %v2314_v60 = vrot.slane %v3313_v57, 2  ;;  %v2317_v27 = vrot.slane %v3313_v57, 4  ;;  %v2320_v3 = vrot.slane %v3313_v57, 6 }
0x1d71   :  { %v2305_v39 = vmax.f32 %v3311_v11, %v2303_v56 }
0x1d73   :  { %v2308_v41 = vmax.f32 %v2305_v39, %v2306_v40 }
0x1d75   :  { %v2311_v58 = vmax.f32 %v2308_v41, %v2309_v8 }
0x1d77   :  { %v2312_v59 = vmax.f32 %v2311_v58, %v3313_v57 }
0x1d79   :  { %v2316_v62 = vmax.f32 %v2312_v59, %v2314_v60 }
0x1d7b   :  { %v2319_v61 = vmax.f32 %v2316_v62, %v2317_v27 }
0x1d7d   :  { %v2322_v34 = vmax.f32 %v2319_v61, %v2320_v3 }
0x1d7f   :  { %v2332_v53 = vrot.slane %v2322_v34, 4  ;;  %v2327_v33 = vrot.slane %v2322_v34, 6  ;;  %v2337_v54 = vrot.slane %v2322_v34, 2  ;;  %v2323_v6 = vsub.f32 %v3311_v11, %v2322_v34 }
0x1d80   :  { %v2342_v18 = vsub.f32 %v3313_v57, %v2322_v34 }
0x1d81   :  { %v2334_v5 = vsub.f32 %v3311_v11, %v2332_v53  ;;  %v2329_v28 = vsub.f32 %v3311_v11, %v2327_v33  ;;  %v2339_v19 = vsub.f32 %v3311_v11, %v2337_v54  ;;  %v2324_v13 = vmul.f32 1.442695, %v2323_v6  ;;  %v2486_v6 = vld [vmem:[%s4243_s12 + $0x10] sm:$0xff] }
0x1d82   :  { %v2345_v17 = vsub.f32 %v3313_v57, %v2327_v33  ;;  %v2348_v51 = vsub.f32 %v3313_v57, %v2332_v53  ;;  %v2351_v20 = vsub.f32 %v3313_v57, %v2337_v54  ;;  %v2343_v9 = vmul.f32 1.442695, %v2342_v18  ;;  %v2487_v54 = vld [vmem:[%s4243_s12 + $0x18] sm:$0xff] }
0x1d83   :  { %v2335_v7 = vmul.f32 1.442695, %v2334_v5  ;;  %v2330_v16 = vmul.f32 1.442695, %v2329_v28  ;;  %v2340_v46 = vmul.f32 1.442695, %v2339_v19  ;;  %3068 = vmatpush3.msra.mxu1 %v2487_v54 }
0x1d84   :  { %v2346_v44 = vmul.f32 1.442695, %v2345_v17  ;;  %v2349_v63 = vmul.f32 1.442695, %v2348_v51  ;;  %v2352_v47 = vmul.f32 1.442695, %v2351_v20  ;;  %3069 = vmatprep.subr.mxu1 %v3416_v1 }
0x1d85   :  { %3314 = vpow2.f32 %v2335_v7  ;;  %3070 = vmatpush3.msra.mxu1 %v2486_v6  ;;  %v2485_v19 = vld [vmem:[%s4243_s12 + $0x8] sm:$0xff]  ;;  %v2484_v7 = vld [vmem:[%s4243_s12] sm:$0xff] }
0x1d86   :  { %3316 = vpow2.f32 %v2330_v16  ;;  %3071 = vmatprep.subr.mxu1 %v3416_v1 }
0x1d87   :  { %3318 = vpow2.f32 %v2324_v13  ;;  %3072 = vmatpush3.msra.mxu1 %v2485_v19 }
0x1d88   :  { %3320 = vpow2.f32 %v2340_v46  ;;  %3073 = vmatprep.subr.mxu1 %v3416_v1 }
0x1d89   :  { %3322 = vpow2.f32 %v2346_v44  ;;  %3074 = vmatpush3.msra.mxu1 %v2484_v7 }
0x1d8a   :  { %3324 = vpow2.f32 %v2349_v63 }
0x1d8b   :  { %3326 = vpow2.f32 %v2343_v9 }
0x1d8c   :  { %3328 = vpow2.f32 %v2352_v47 }
0x1d92   :  { %v3315_v22 = vpop.eup %3314 }
0x1d93   :  { %v3317_v42 = vpop.eup %3316  ;;  %2400 = vperm.xlu1 %3105, %v3315_v22   ;;  %v2359_v26 = vrot.slane %v3315_v22, 4 }
0x1d94   :  { %v3319_v24 = vpop.eup %3318  ;;  %2386 = vperm.xlu0 %3104, %v3317_v42   ;;  %v2355_v30 = vrot.slane %v3317_v42, 2 }
0x1d95   :  { %v3321_v25 = vpop.eup %3320 }
0x1d96   :  { %v2357_v45 = vadd.f32 %v3319_v24, %v2355_v30  ;;  %v2363_v32 = vrot.slane %v3321_v25, 6  ;;  %v3323_v48 = vpop.eup %3322 }
0x1d97   :  { %2414 = vperm.xlu1 %3105, %v3321_v25   ;;  %v3325_v4 = vpop.eup %3324  ;;  %v2368_v37 = vrot.slane %v3323_v48, 2 }
0x1d98   :  { %2389 = vrot.lane.b32.xlu0 %v2184_v21, %s3422_s20  ;;  %v2361_v50 = vadd.f32 %v2359_v26, %v2357_v45  ;;  %v3327_v36 = vpop.eup %3326  ;;  %v2372_v11 = vrot.slane %v3325_v4, 4 }
0x1d99   :  { %v3329_v15 = vpop.eup %3328 }
0x1d9a   :  { %v2365_v35 = vadd.f32 %v2363_v32, %v2361_v50  ;;  %v2376_v21 = vrot.slane %v3329_v15, 6  ;;  %v2667_v50 = vld [vmem:[%s4244_s13] ss:$0 sm:$0xff] }
0x1d9b   :  { %2417 = vrot.lane.b32.xlu1 %v2188_v14, %s3422_s20 }
0x1d9c   :  { %2435 = vperm.xlu0 %3104, %v3323_v48   ;;  %v2366_v52 = vadd.f32 %v3327_v36, %v2365_v35 }
0x1d9e   :  { %v2370_v38 = vadd.f32 %v2368_v37, %v2366_v52 }
0x1d9f   :  { %2463 = vperm.xlu1 %3105, %v3329_v15  }
0x1da0   :  { %2449 = vperm.xlu0 %3104, %v3325_v4   ;;  %v2374_v49 = vadd.f32 %v2372_v11, %v2370_v38 }
0x1da2   :  { %v2378_v56 = vadd.f32 %v2376_v21, %v2374_v49 }
0x1da3   :  { %2452 = vrot.lane.b32.xlu1 %v2192_v2, %s3422_s20 }
0x1da4   :  { %2438 = vrot.lane.b32.xlu0 %v2190_v29, %s3422_s20  ;;  %3330 = vrcp.f32 %v2378_v56 }
0x1da7   :  { %2381 = vperm.xlu1 %3105, %v3319_v24  }
0x1da8   :  { %2466 = vrot.lane.b32.xlu0 %v2195_v43, %s3422_s20 }
0x1dac   :  { %2429 = vperm.xlu0 %3104, %v3327_v36  }
0x1db1   :  { %v3331_v60 = vpop.eup %3330 }
0x1e0e   :  { %v2401_v14 = vpop.permute.xlu1 %2400 }
0x1e0f   :  { %v2387_v39 = vpop.permute.xlu0 %2386  ;;  %v2406_v40 = vmul.f32 %v2404_v31, %v2401_v14 }
0x1e11   :  { %v2408_v41 = vrot.slane %v2406_v40, 4 }
0x1e12   :  { %v2415_v8 = vpop.permute.xlu1 %2414 }
0x1e13   :  { %v2390_v57 = vpop.permute.xlu0 %2389  ;;  %2409 = vrot.lane.b32.xlu0 %v2408_v41, %s3423_s10 }
0x1e14   :  { %v2392_v0 = vmul.f32 %v2390_v57, %v2387_v39 }
0x1e16   :  { %v2394_v10 = vrot.slane %v2392_v0, 2  ;;  %v2418_v29 = vpop.permute.xlu1 %2417 }
0x1e17   :  { %v2436_v2 = vpop.permute.xlu0 %2435  ;;  %v2420_v58 = vmul.f32 %v2418_v29, %v2415_v8 }
0x1e18   :  { %2395 = vrot.lane.b32.xlu1 %v2394_v10, %s3423_s10 }
0x1e19   :  { %v2422_v55 = vrot.slane %v2420_v58, 6 }
0x1e1a   :  { %v2464_v43 = vpop.permute.xlu1 %2463 }
0x1e1b   :  { %v2450_v59 = vpop.permute.xlu0 %2449 }
0x1e1c   :  { %2423 = vrot.lane.b32.xlu1 %v2422_v55, %s3423_s10 }
0x1e1e   :  { %v2453_v27 = vpop.permute.xlu1 %2452 }
0x1e1f   :  { %v2439_v62 = vpop.permute.xlu0 %2438  ;;  %v2455_v34 = vmul.f32 %v2453_v27, %v2450_v59 }
0x1e20   :  { %v2441_v61 = vmul.f32 %v2439_v62, %v2436_v2  ;;  %2480 = vperm.xlu1 %3105, %v3331_v60  }
0x1e21   :  { %v2457_v5 = vrot.slane %v2455_v34, 4 }
0x1e22   :  { %v2443_v3 = vrot.slane %v2441_v61, 2  ;;  %v2382_v16 = vpop.permute.xlu1 %2381 }
0x1e23   :  { %v2467_v53 = vpop.permute.xlu0 %2466  ;;  %v2384_v46 = vmul.f32 %v2382_v16, %v3725_v23 }
0x1e24   :  { %v2469_v33 = vmul.f32 %v2467_v53, %v2464_v43  ;;  %2444 = vrot.lane.b32.xlu0 %v2443_v3, %s3423_s10 }
0x1e26   :  { %v2471_v28 = vrot.slane %v2469_v33, 6 }
0x1e27   :  { %v2430_v17 = vpop.permute.xlu0 %2429 }
0x1e28   :  { %2472 = vrot.lane.b32.xlu1 %v2471_v28, %s3423_s10  ;;  %2458 = vrot.lane.b32.xlu0 %v2457_v5, %s3423_s10  ;;  %v2432_v47 = vmul.f32 %v2430_v17, %v4012_v12 }
0x1e85   :  { %v2410_v18 = vpop.permute.xlu0 %2409 }
0x1e8a   :  { %v2396_v13 = vpop.permute.xlu1 %2395 }
0x1e8b   :  { %v2398_v51 = vadd.f32 %v2396_v13, %v2384_v46 }
0x1e8d   :  { %v2412_v44 = vadd.f32 %v2410_v18, %v2398_v51 }
0x1e8e   :  { %v2424_v20 = vpop.permute.xlu1 %2423 }
0x1e8f   :  { %v2426_v63 = vadd.f32 %v2424_v20, %v2412_v44 }
0x1e91   :  { %v2433_v22 = vadd.f32 %v2432_v47, %v2426_v63 }
0x1e96   :  { %v2445_v9 = vpop.permute.xlu0 %2444 }
0x1e97   :  { %v2447_v30 = vadd.f32 %v2445_v9, %v2433_v22 }
0x1e9a   :  { %v2459_v42 = vpop.permute.xlu0 %2458 }
0x1e9b   :  { %v2481_v24 = vpop.permute.xlu1 %2480  ;;  %v2461_v25 = vadd.f32 %v2459_v42, %v2447_v30 }
0x1e9f   :  { %v2473_v1 = vpop.permute.xlu1 %2472 }
0x1ea0   :  { %v2475_v45 = vadd.f32 %v2473_v1, %v2461_v25 }
0x1ea2   :  { %v2483_v26 = vmul.f32 %v2481_v24, %v2475_v45 }
0x1ea4   :  { %2496 = vrot.lane.b32.xlu0 %v2483_v26, %s3422_s20  ;;  %s3424_s20 = smov [#allocation8]  }
0x1ea5   :  { %s2589_s7 = sshll.u32 %s3424_s20, 4  ;;  %s2590_s7 = int_to_ptr.vmem [resolvable:$true] %s2589_s7 }
0x1ea6   :  { %s3388_s13 = scalar_lea.vmem %s2590_s7, 32  ;;  %p3393_p11 = scmp.lt.s32.totalorder %s2590_s7, %s2590_s7 }
0x1ea7   :  { %p3389_p10 = scmp.ne.s32.totalorder %s2590_s7, %s3388_s13  ;;  %p3394_p12 = scmp.lt.s32.totalorder %s3388_s13, %s3388_s13 }
0x1ea9   :  { %p3395_p13 = por %p3394_p12, %p3393_p11 }
0x1eab   :  { %p3396_p0 = pnand %p3395_p13, %p3389_p10 }
0x1f16   :  { %v2497_v23 = vpop.permute.xlu0 %2496 }
0x1f17   :  { %3076 = vmatmul.mubr.msk.f32.vlgmr.msra.gmra.mxu1 %vm271_vm7, %v2497_v23 }
0x1fd7   :  { %v2566_v32 = vpop.f32.mrf.mxu1 }
0x1fd8   :  { %v2567_v12 = vadd.f32 %v2667_v50, %v2566_v32 }
0x1fd9   :  { %v3077_v48 = vpop.f32.mrf.mxu1 }
0x1fda   :  { %v2571_v4 = vsel %vm2570_vm10, %v2567_v12, -inf }
0x1fdb   :  { %2572 = vmax.xlane.f32.xlu1 %v2571_v4 }
0x2064   :  { %v2573_v35 = vpop.xlane.xlu1 %2572 }
0x2065   :  { %v2574_v36 = vsub.f32 %v2567_v12, %v2573_v35 }
0x2067   :  { %v2575_v52 = vmul.f32 1.442695, %v2574_v36 }
0x2069   :  { %3332 = vpow2.f32 %v2575_v52 }
0x2076   :  { %v3333_v37 = vpop.eup %3332 }
0x2077   :  { %v2577_v15 = vsel %vm2570_vm10, %v3333_v37, 0.0 }
0x2078   :  { %2578 = vadd.xlane.f32.xlu0 %v2577_v15 }
0x2101   :  { %v2579_v38 = vpop.xlane.xlu0 %2578 }
0x2102   :  { %3334 = vrcp.f32 %v2579_v38 }
0x210f   :  { %v3335_v11 = vpop.eup %3334 }
0x2110   :  { %v2581_v49 = vmul.f32 %v3335_v11, %v3333_v37 }
0x2112   :  { %2582 = vst.msk [vmem:[#allocation8] sm:$0x3] %vm2570_vm10, %v2581_v49 }
0x2113   :  { %3399 = shalt.err (!%p3396_p0)
}
0x2114   :  { %2592 = dma.vmem_to_hbm [thread:$0]  %s2590_s7, 32, %s4245_s14, [#allocation5]  }
0x2115   :  { %3412 = dma.done.wait [#allocation5], 32  }
0x2116   :  { %3413 = vsyncadd [#allocation5], 4294967264 }
0x2117   :  { %2596 = vsyncpa [#allocation4], 1 }
0x2118   :  { %2597 = vsyncpa [#allocation7], 1 }
0x2119   :  { %2598 = vsyncpa [#allocation5], 1 }

</bundles_post_ra>
